<compile_context>
chip_gen: v7x
topology: tpu7x:2x2x1
jax: 0.10.0
libtpu: 0.0.40
codegen_flags: <defaults>
</compile_context>

<pallas_src>
import functools

import jax
import jax.numpy as jnp
from jax import lax
from jax.experimental import pallas as pl
from jax.experimental.pallas import tpu as pltpu

EMBED = 2       # embedding_dim
HIDDEN = 5      # n_hidden
NUM_CLASSES = 2
NUM_GATES = 4   # PyTorch LSTM gate order: [i | f | g | o]


def _bilstm_attn_kernel(emb_ref,                         # (T*B, E) time-major, flattened
                        wih_f_ref, whh_f_ref, b_f_ref,   # (4,E,H), (4,H,H), (4,1,H)
                        wih_b_ref, whh_b_ref, b_b_ref,   # (4,E,H), (4,H,H), (4,1,H)
                        wout_f_ref, wout_b_ref, b_out_ref,  # (H,2), (H,2), (1,2)
                        logits_ref, attn_ref,            # outputs: (B,2), (B,T)
                        *, seq_len, batch, hidden):
    T, B, H = seq_len, batch, hidden

    emb2d = emb_ref[...]                                 # (T*B, E)

    # Per-gate weights: each gate lane-aligned at offset 0.
    wih_f = [wih_f_ref[g] for g in range(NUM_GATES)]
    whh_f = [whh_f_ref[g] for g in range(NUM_GATES)]
    bia_f = [b_f_ref[g] for g in range(NUM_GATES)]
    wih_b = [wih_b_ref[g] for g in range(NUM_GATES)]
    whh_b = [whh_b_ref[g] for g in range(NUM_GATES)]
    bia_b = [b_b_ref[g] for g in range(NUM_GATES)]

    # ---- hoisted input projection (off the serial recurrence path) ----
    # one (T*B,E)x(E,H) matmul per gate/direction; bias (b_ih + b_hh) folded in.
    def hoist(wih, bias):
        return [jnp.dot(emb2d, wih[g], preferred_element_type=jnp.float32) + bias[g]
                for g in range(NUM_GATES)]               # each (T*B, H)

    gin_f = hoist(wih_f, bia_f)
    gin_b = hoist(wih_b, bia_b)

    def tstep_rows(a, t):                                # rows of timestep t -> (B, H)
        return lax.slice(a, (t * B, 0), (t * B + B, H))

    def lstm_step(h, c, gin, whh, t):
        # Only h @ W_hh remains on the serial dependency chain.
        # TODO(synk): with H=5 these tiny dots go to the MXU; an explicit VPU
        # broadcast-FMA form was not clearly better, so jnp.dot is kept.
        d = lambda w: jnp.dot(h, w, preferred_element_type=jnp.float32)
        i = jax.nn.sigmoid(tstep_rows(gin[0], t) + d(whh[0]))
        f = jax.nn.sigmoid(tstep_rows(gin[1], t) + d(whh[1]))
        g = jnp.tanh(tstep_rows(gin[2], t) + d(whh[2]))
        o = jax.nn.sigmoid(tstep_rows(gin[3], t) + d(whh[3]))
        c = f * c + i * g
        h = o * jnp.tanh(c)
        return h, c

    zeros = jnp.zeros((B, H), jnp.float32)
    h_f, c_f = zeros, zeros
    h_b, c_b = zeros, zeros
    out_f = [None] * T
    out_b = [None] * T

    # Fully unrolled; forward (t = s) and backward (t = T-1-s) fused per
    # iteration; per-timestep hidden states stay in registers (no VMEM scratch).
    for s in range(T):
        tf, tb = s, T - 1 - s
        h_f, c_f = lstm_step(h_f, c_f, gin_f, whh_f, tf)
        h_b, c_b = lstm_step(h_b, c_b, gin_b, whh_b, tb)
        out_f[tf] = h_f
        out_b[tb] = h_b

    # Reproduce PyTorch's `final_hidden_state.view(-1, 2H, 1)` quirk exactly:
    # flatten (2, B, H) row-major, regroup into B rows of 2H; output row b is
    # [flat_row(2b) | flat_row(2b+1)].  Kept as two split (B, H) halves so no
    # lane concatenation is ever needed (sublane row copies only).
    srcs = (h_f, h_b)
    lo_rows, hi_rows = [], []
    for b in range(B):
        d0, s0 = divmod(2 * b, B)
        d1, s1 = divmod(2 * b + 1, B)
        lo_rows.append(lax.slice(srcs[d0], (s0, 0), (s0 + 1, H)))
        hi_rows.append(lax.slice(srcs[d1], (s1, 0), (s1 + 1, H)))
    hid_lo = jnp.concatenate(lo_rows, axis=0)            # (B, H)
    hid_hi = jnp.concatenate(hi_rows, axis=0)            # (B, H)

    # Attention scores per timestep (B, 1); softmax over time on registers.
    scores = [jnp.sum(out_f[t] * hid_lo + out_b[t] * hid_hi, axis=1, keepdims=True)
              for t in range(T)]
    m = scores[0]
    for t in range(1, T):
        m = jnp.maximum(m, scores[t])
    exps = [jnp.exp(sc - m) for sc in scores]
    den = exps[0]
    for t in range(1, T):
        den = den + exps[t]
    inv = 1.0 / den                                      # exact division (matches ref)
    soft = [e * inv for e in exps]                       # T x (B, 1)

    # Context in split halves (no (T,B,2H) concatenate).
    ctx_f = soft[0] * out_f[0]
    ctx_b = soft[0] * out_b[0]
    for t in range(1, T):
        ctx_f = ctx_f + soft[t] * out_f[t]
        ctx_b = ctx_b + soft[t] * out_b[t]

    logits = (jnp.dot(ctx_f, wout_f_ref[...], preferred_element_type=jnp.float32)
              + jnp.dot(ctx_b, wout_b_ref[...], preferred_element_type=jnp.float32)
              + b_out_ref[...])                          # (B, 2)

    logits_ref[...] = logits
    attn_ref[...] = jnp.concatenate(soft, axis=1)        # (B, T), no wrapper transpose


def _split_gates(w, lead):
    """(lead, 4H) with gate order [i|f|g|o] -> (4, lead, H); gates lane-aligned."""
    return jnp.transpose(w.reshape(lead, NUM_GATES, HIDDEN), (1, 0, 2))


def bilstm_attention_forward(x, params):
    """x: (B, T) int32 token ids.  Returns (logits (B, 2), attention (B, T))."""
    B, T = x.shape
    # Embedding lookup (gather) + weight re-layout are XLA-side glue.
    emb = params["emb"][x]                                     # (B, T, E)
    inp = jnp.transpose(emb, (1, 0, 2)).astype(jnp.float32)    # (T, B, E) time-major
    emb2d = inp.reshape(T * B, EMBED)                          # (T*B, E)

    wih_f = _split_gates(params["w_ih_f"], EMBED)              # (4, E, H)
    whh_f = _split_gates(params["w_hh_f"], HIDDEN)             # (4, H, H)
    b_f = _split_gates(params["b_f"], 1)                       # (4, 1, H)
    wih_b = _split_gates(params["w_ih_b"], EMBED)
    whh_b = _split_gates(params["w_hh_b"], HIDDEN)
    b_b = _split_gates(params["b_b"], 1)
    wout_f = params["w_out"][:HIDDEN]                          # (H, 2)
    wout_b = params["w_out"][HIDDEN:]                          # (H, 2)

    kernel = functools.partial(_bilstm_attn_kernel,
                               seq_len=T, batch=B, hidden=HIDDEN)
    vmem = pl.BlockSpec(memory_space=pltpu.MemorySpace.VMEM)

    logits, attn = pl.pallas_call(
        kernel,
        out_shape=(jax.ShapeDtypeStruct((B, NUM_CLASSES), jnp.float32),
                   jax.ShapeDtypeStruct((B, T), jnp.float32)),
        in_specs=[vmem] * 10,
        out_specs=(vmem, vmem),
    )(emb2d,
      wih_f, whh_f, b_f,
      wih_b, whh_b, b_b,
      wout_f, wout_b, params["b_out"])

    return logits, attn


def init_params(key, vocab_size):
    """Deterministic synthetic parameters with the shapes nn.Module.__init__ implies."""
    ks = jax.random.split(key, 9)
    s = 1.0 / float(jnp.sqrt(jnp.float32(HIDDEN)))
    u = lambda k, shape: jax.random.uniform(k, shape, jnp.float32, -s, s)
    return dict(
        emb=jax.random.normal(ks[0], (vocab_size, EMBED), jnp.float32),
        # LSTM weights stored transposed: (in_features, 4H); bias = b_ih + b_hh fused.
        w_ih_f=u(ks[1], (EMBED, 4 * HIDDEN)),
        w_hh_f=u(ks[2], (HIDDEN, 4 * HIDDEN)),
        b_f=u(ks[3], (1, 4 * HIDDEN)),
        w_ih_b=u(ks[4], (EMBED, 4 * HIDDEN)),
        w_hh_b=u(ks[5], (HIDDEN, 4 * HIDDEN)),
        b_b=u(ks[6], (1, 4 * HIDDEN)),
        w_out=u(ks[7], (2 * HIDDEN, NUM_CLASSES)),
        b_out=u(ks[8], (1, NUM_CLASSES)),
    )


def reference_forward(x, p):
    """Pure-JAX reference mirroring the PyTorch forward (for correctness check)."""
    B, T = x.shape
    emb = p["emb"][x]
    inp = jnp.transpose(emb, (1, 0, 2)).astype(jnp.float32)  # (T, B, E)

    def run(w_ih, w_hh, b, xs):
        h = jnp.zeros((B, HIDDEN), jnp.float32)
        c = jnp.zeros((B, HIDDEN), jnp.float32)
        outs = []
        for t in range(xs.shape[0]):
            g = xs[t] @ w_ih + h @ w_hh + b
            i = jax.nn.sigmoid(g[:, :HIDDEN])
            f = jax.nn.sigmoid(g[:, HIDDEN:2 * HIDDEN])
            gg = jnp.tanh(g[:, 2 * HIDDEN:3 * HIDDEN])
            o = jax.nn.sigmoid(g[:, 3 * HIDDEN:])
            c = f * c + i * gg
            h = o * jnp.tanh(c)
            outs.append(h)
        return jnp.stack(outs, 0), h

    out_f, h_f = run(p["w_ih_f"], p["w_hh_f"], p["b_f"], inp)
    out_b_rev, h_b = run(p["w_ih_b"], p["w_hh_b"], p["b_b"], inp[::-1])
    out_b = out_b_rev[::-1]
    out = jnp.concatenate([out_f, out_b], axis=-1)            # (T, B, 2H)
    outp = jnp.transpose(out, (1, 0, 2))                      # (B, T, 2H)
    hid = jnp.stack([h_f, h_b], 0).reshape(B, 2 * HIDDEN)     # .view(-1, 2H, 1) quirk
    attn = jnp.einsum('btk,bk->bt', outp, hid)
    soft = jax.nn.softmax(attn, axis=1)
    ctx = jnp.einsum('btk,bt->bk', outp, soft)
    logits = ctx @ p["w_out"] + p["b_out"]
    return logits, soft


if __name__ == "__main__":
    key = jax.random.PRNGKey(0)
    VOCAB, B, T = 16, 4, 6
    pkey, xkey = jax.random.split(key)
    params = init_params(pkey, VOCAB)
    x = jax.random.randint(xkey, (B, T), 0, VOCAB, dtype=jnp.int32)

    logits, attn = jax.jit(bilstm_attention_forward)(x, params)
    jax.block_until_ready((logits, attn))

    ref_logits, ref_attn = reference_forward(x, params)
    assert logits.shape == (B, NUM_CLASSES) and attn.shape == (B, T)
    assert jnp.allclose(logits, ref_logits, atol=1e-5, rtol=1e-5)
    assert jnp.allclose(attn, ref_attn, atol=1e-5, rtol=1e-5)

    print("KERNEL_OK")
</pallas_src>

<mosaic_0001>
module attributes {stable_mosaic.version = 11 : i64} {
  func.func @_bilstm_attn_kernel(%arg0: memref<24x2xf32, #tpu.memory_space<vmem>>, %arg1: memref<4x2x5xf32, #tpu.memory_space<vmem>>, %arg2: memref<4x5x5xf32, #tpu.memory_space<vmem>>, %arg3: memref<4x1x5xf32, #tpu.memory_space<vmem>>, %arg4: memref<4x2x5xf32, #tpu.memory_space<vmem>>, %arg5: memref<4x5x5xf32, #tpu.memory_space<vmem>>, %arg6: memref<4x1x5xf32, #tpu.memory_space<vmem>>, %arg7: memref<5x2xf32, #tpu.memory_space<vmem>>, %arg8: memref<5x2xf32, #tpu.memory_space<vmem>>, %arg9: memref<1x2xf32, #tpu.memory_space<vmem>>, %arg10: memref<4x2xf32, #tpu.memory_space<vmem>>, %arg11: memref<4x6xf32, #tpu.memory_space<vmem>>) attributes {dimension_semantics = [], scalar_prefetch = 0 : i64, scratch_operands = 0 : i64, tpu.core_type = #tpu.core_type<tc>} {
    %c0 = arith.constant 0 : index
    %c0_0 = arith.constant 0 : index
    %0 = vector.load %arg0[%c0, %c0_0] : memref<24x2xf32, #tpu.memory_space<vmem>>, vector<24x2xf32>
    %c0_1 = arith.constant 0 : index
    %c0_2 = arith.constant 0 : index
    %c0_3 = arith.constant 0 : index
    %1 = vector.load %arg1[%c0_1, %c0_2, %c0_3] : memref<4x2x5xf32, #tpu.memory_space<vmem>>, vector<1x2x5xf32>
    %2 = vector.shape_cast %1 : vector<1x2x5xf32> to vector<2x5xf32>
    %c1 = arith.constant 1 : index
    %c0_4 = arith.constant 0 : index
    %c0_5 = arith.constant 0 : index
    %3 = vector.load %arg1[%c1, %c0_4, %c0_5] : memref<4x2x5xf32, #tpu.memory_space<vmem>>, vector<1x2x5xf32>
    %4 = vector.shape_cast %3 : vector<1x2x5xf32> to vector<2x5xf32>
    %c2 = arith.constant 2 : index
    %c0_6 = arith.constant 0 : index
    %c0_7 = arith.constant 0 : index
    %5 = vector.load %arg1[%c2, %c0_6, %c0_7] : memref<4x2x5xf32, #tpu.memory_space<vmem>>, vector<1x2x5xf32>
    %6 = vector.shape_cast %5 : vector<1x2x5xf32> to vector<2x5xf32>
    %c3 = arith.constant 3 : index
    %c0_8 = arith.constant 0 : index
    %c0_9 = arith.constant 0 : index
    %7 = vector.load %arg1[%c3, %c0_8, %c0_9] : memref<4x2x5xf32, #tpu.memory_space<vmem>>, vector<1x2x5xf32>
    %8 = vector.shape_cast %7 : vector<1x2x5xf32> to vector<2x5xf32>
    %c0_10 = arith.constant 0 : index
    %c0_11 = arith.constant 0 : index
    %c0_12 = arith.constant 0 : index
    %9 = vector.load %arg2[%c0_10, %c0_11, %c0_12] : memref<4x5x5xf32, #tpu.memory_space<vmem>>, vector<1x5x5xf32>
    %10 = vector.shape_cast %9 : vector<1x5x5xf32> to vector<5x5xf32>
    %c1_13 = arith.constant 1 : index
    %c0_14 = arith.constant 0 : index
    %c0_15 = arith.constant 0 : index
    %11 = vector.load %arg2[%c1_13, %c0_14, %c0_15] : memref<4x5x5xf32, #tpu.memory_space<vmem>>, vector<1x5x5xf32>
    %12 = vector.shape_cast %11 : vector<1x5x5xf32> to vector<5x5xf32>
    %c2_16 = arith.constant 2 : index
    %c0_17 = arith.constant 0 : index
    %c0_18 = arith.constant 0 : index
    %13 = vector.load %arg2[%c2_16, %c0_17, %c0_18] : memref<4x5x5xf32, #tpu.memory_space<vmem>>, vector<1x5x5xf32>
    %14 = vector.shape_cast %13 : vector<1x5x5xf32> to vector<5x5xf32>
    %c3_19 = arith.constant 3 : index
    %c0_20 = arith.constant 0 : index
    %c0_21 = arith.constant 0 : index
    %15 = vector.load %arg2[%c3_19, %c0_20, %c0_21] : memref<4x5x5xf32, #tpu.memory_space<vmem>>, vector<1x5x5xf32>
    %16 = vector.shape_cast %15 : vector<1x5x5xf32> to vector<5x5xf32>
    %c0_22 = arith.constant 0 : index
    %c0_23 = arith.constant 0 : index
    %c0_24 = arith.constant 0 : index
    %17 = vector.load %arg3[%c0_22, %c0_23, %c0_24] : memref<4x1x5xf32, #tpu.memory_space<vmem>>, vector<1x1x5xf32>
    %18 = vector.shape_cast %17 : vector<1x1x5xf32> to vector<1x5xf32>
    %c1_25 = arith.constant 1 : index
    %c0_26 = arith.constant 0 : index
    %c0_27 = arith.constant 0 : index
    %19 = vector.load %arg3[%c1_25, %c0_26, %c0_27] : memref<4x1x5xf32, #tpu.memory_space<vmem>>, vector<1x1x5xf32>
    %20 = vector.shape_cast %19 : vector<1x1x5xf32> to vector<1x5xf32>
    %c2_28 = arith.constant 2 : index
    %c0_29 = arith.constant 0 : index
    %c0_30 = arith.constant 0 : index
    %21 = vector.load %arg3[%c2_28, %c0_29, %c0_30] : memref<4x1x5xf32, #tpu.memory_space<vmem>>, vector<1x1x5xf32>
    %22 = vector.shape_cast %21 : vector<1x1x5xf32> to vector<1x5xf32>
    %c3_31 = arith.constant 3 : index
    %c0_32 = arith.constant 0 : index
    %c0_33 = arith.constant 0 : index
    %23 = vector.load %arg3[%c3_31, %c0_32, %c0_33] : memref<4x1x5xf32, #tpu.memory_space<vmem>>, vector<1x1x5xf32>
    %24 = vector.shape_cast %23 : vector<1x1x5xf32> to vector<1x5xf32>
    %c0_34 = arith.constant 0 : index
    %c0_35 = arith.constant 0 : index
    %c0_36 = arith.constant 0 : index
    %25 = vector.load %arg4[%c0_34, %c0_35, %c0_36] : memref<4x2x5xf32, #tpu.memory_space<vmem>>, vector<1x2x5xf32>
    %26 = vector.shape_cast %25 : vector<1x2x5xf32> to vector<2x5xf32>
    %c1_37 = arith.constant 1 : index
    %c0_38 = arith.constant 0 : index
    %c0_39 = arith.constant 0 : index
    %27 = vector.load %arg4[%c1_37, %c0_38, %c0_39] : memref<4x2x5xf32, #tpu.memory_space<vmem>>, vector<1x2x5xf32>
    %28 = vector.shape_cast %27 : vector<1x2x5xf32> to vector<2x5xf32>
    %c2_40 = arith.constant 2 : index
    %c0_41 = arith.constant 0 : index
    %c0_42 = arith.constant 0 : index
    %29 = vector.load %arg4[%c2_40, %c0_41, %c0_42] : memref<4x2x5xf32, #tpu.memory_space<vmem>>, vector<1x2x5xf32>
    %30 = vector.shape_cast %29 : vector<1x2x5xf32> to vector<2x5xf32>
    %c3_43 = arith.constant 3 : index
    %c0_44 = arith.constant 0 : index
    %c0_45 = arith.constant 0 : index
    %31 = vector.load %arg4[%c3_43, %c0_44, %c0_45] : memref<4x2x5xf32, #tpu.memory_space<vmem>>, vector<1x2x5xf32>
    %32 = vector.shape_cast %31 : vector<1x2x5xf32> to vector<2x5xf32>
    %c0_46 = arith.constant 0 : index
    %c0_47 = arith.constant 0 : index
    %c0_48 = arith.constant 0 : index
    %33 = vector.load %arg5[%c0_46, %c0_47, %c0_48] : memref<4x5x5xf32, #tpu.memory_space<vmem>>, vector<1x5x5xf32>
    %34 = vector.shape_cast %33 : vector<1x5x5xf32> to vector<5x5xf32>
    %c1_49 = arith.constant 1 : index
    %c0_50 = arith.constant 0 : index
    %c0_51 = arith.constant 0 : index
    %35 = vector.load %arg5[%c1_49, %c0_50, %c0_51] : memref<4x5x5xf32, #tpu.memory_space<vmem>>, vector<1x5x5xf32>
    %36 = vector.shape_cast %35 : vector<1x5x5xf32> to vector<5x5xf32>
    %c2_52 = arith.constant 2 : index
    %c0_53 = arith.constant 0 : index
    %c0_54 = arith.constant 0 : index
    %37 = vector.load %arg5[%c2_52, %c0_53, %c0_54] : memref<4x5x5xf32, #tpu.memory_space<vmem>>, vector<1x5x5xf32>
    %38 = vector.shape_cast %37 : vector<1x5x5xf32> to vector<5x5xf32>
    %c3_55 = arith.constant 3 : index
    %c0_56 = arith.constant 0 : index
    %c0_57 = arith.constant 0 : index
    %39 = vector.load %arg5[%c3_55, %c0_56, %c0_57] : memref<4x5x5xf32, #tpu.memory_space<vmem>>, vector<1x5x5xf32>
    %40 = vector.shape_cast %39 : vector<1x5x5xf32> to vector<5x5xf32>
    %c0_58 = arith.constant 0 : index
    %c0_59 = arith.constant 0 : index
    %c0_60 = arith.constant 0 : index
    %41 = vector.load %arg6[%c0_58, %c0_59, %c0_60] : memref<4x1x5xf32, #tpu.memory_space<vmem>>, vector<1x1x5xf32>
    %42 = vector.shape_cast %41 : vector<1x1x5xf32> to vector<1x5xf32>
    %c1_61 = arith.constant 1 : index
    %c0_62 = arith.constant 0 : index
    %c0_63 = arith.constant 0 : index
    %43 = vector.load %arg6[%c1_61, %c0_62, %c0_63] : memref<4x1x5xf32, #tpu.memory_space<vmem>>, vector<1x1x5xf32>
    %44 = vector.shape_cast %43 : vector<1x1x5xf32> to vector<1x5xf32>
    %c2_64 = arith.constant 2 : index
    %c0_65 = arith.constant 0 : index
    %c0_66 = arith.constant 0 : index
    %45 = vector.load %arg6[%c2_64, %c0_65, %c0_66] : memref<4x1x5xf32, #tpu.memory_space<vmem>>, vector<1x1x5xf32>
    %46 = vector.shape_cast %45 : vector<1x1x5xf32> to vector<1x5xf32>
    %c3_67 = arith.constant 3 : index
    %c0_68 = arith.constant 0 : index
    %c0_69 = arith.constant 0 : index
    %47 = vector.load %arg6[%c3_67, %c0_68, %c0_69] : memref<4x1x5xf32, #tpu.memory_space<vmem>>, vector<1x1x5xf32>
    %48 = vector.shape_cast %47 : vector<1x1x5xf32> to vector<1x5xf32>
    %cst = arith.constant dense<0.000000e+00> : vector<24x5xf32>
    %49 = tpu.matmul %0, %2, %cst {dimension_numbers = #tpu.dot_dimension_numbers<[1], [0], [0], [1], [0, 0, 1, 1], [], []>} : vector<24x2xf32>, vector<2x5xf32>, vector<24x5xf32> -> vector<24x5xf32>
    %50 = vector.broadcast %18 : vector<1x5xf32> to vector<24x5xf32>
    %51 = arith.addf %49, %50 : vector<24x5xf32>
    %cst_70 = arith.constant dense<0.000000e+00> : vector<24x5xf32>
    %52 = tpu.matmul %0, %4, %cst_70 {dimension_numbers = #tpu.dot_dimension_numbers<[1], [0], [0], [1], [0, 0, 1, 1], [], []>} : vector<24x2xf32>, vector<2x5xf32>, vector<24x5xf32> -> vector<24x5xf32>
    %53 = vector.broadcast %20 : vector<1x5xf32> to vector<24x5xf32>
    %54 = arith.addf %52, %53 : vector<24x5xf32>
    %cst_71 = arith.constant dense<0.000000e+00> : vector<24x5xf32>
    %55 = tpu.matmul %0, %6, %cst_71 {dimension_numbers = #tpu.dot_dimension_numbers<[1], [0], [0], [1], [0, 0, 1, 1], [], []>} : vector<24x2xf32>, vector<2x5xf32>, vector<24x5xf32> -> vector<24x5xf32>
    %56 = vector.broadcast %22 : vector<1x5xf32> to vector<24x5xf32>
    %57 = arith.addf %55, %56 : vector<24x5xf32>
    %cst_72 = arith.constant dense<0.000000e+00> : vector<24x5xf32>
    %58 = tpu.matmul %0, %8, %cst_72 {dimension_numbers = #tpu.dot_dimension_numbers<[1], [0], [0], [1], [0, 0, 1, 1], [], []>} : vector<24x2xf32>, vector<2x5xf32>, vector<24x5xf32> -> vector<24x5xf32>
    %59 = vector.broadcast %24 : vector<1x5xf32> to vector<24x5xf32>
    %60 = arith.addf %58, %59 : vector<24x5xf32>
    %cst_73 = arith.constant dense<0.000000e+00> : vector<24x5xf32>
    %61 = tpu.matmul %0, %26, %cst_73 {dimension_numbers = #tpu.dot_dimension_numbers<[1], [0], [0], [1], [0, 0, 1, 1], [], []>} : vector<24x2xf32>, vector<2x5xf32>, vector<24x5xf32> -> vector<24x5xf32>
    %62 = vector.broadcast %42 : vector<1x5xf32> to vector<24x5xf32>
    %63 = arith.addf %61, %62 : vector<24x5xf32>
    %cst_74 = arith.constant dense<0.000000e+00> : vector<24x5xf32>
    %64 = tpu.matmul %0, %28, %cst_74 {dimension_numbers = #tpu.dot_dimension_numbers<[1], [0], [0], [1], [0, 0, 1, 1], [], []>} : vector<24x2xf32>, vector<2x5xf32>, vector<24x5xf32> -> vector<24x5xf32>
    %65 = vector.broadcast %44 : vector<1x5xf32> to vector<24x5xf32>
    %66 = arith.addf %64, %65 : vector<24x5xf32>
    %cst_75 = arith.constant dense<0.000000e+00> : vector<24x5xf32>
    %67 = tpu.matmul %0, %30, %cst_75 {dimension_numbers = #tpu.dot_dimension_numbers<[1], [0], [0], [1], [0, 0, 1, 1], [], []>} : vector<24x2xf32>, vector<2x5xf32>, vector<24x5xf32> -> vector<24x5xf32>
    %68 = vector.broadcast %46 : vector<1x5xf32> to vector<24x5xf32>
    %69 = arith.addf %67, %68 : vector<24x5xf32>
    %cst_76 = arith.constant dense<0.000000e+00> : vector<24x5xf32>
    %70 = tpu.matmul %0, %32, %cst_76 {dimension_numbers = #tpu.dot_dimension_numbers<[1], [0], [0], [1], [0, 0, 1, 1], [], []>} : vector<24x2xf32>, vector<2x5xf32>, vector<24x5xf32> -> vector<24x5xf32>
    %71 = vector.broadcast %48 : vector<1x5xf32> to vector<24x5xf32>
    %72 = arith.addf %70, %71 : vector<24x5xf32>
    %cst_77 = arith.constant 0.000000e+00 : f32
    %73 = vector.broadcast %cst_77 : f32 to vector<4x5xf32>
    %74 = vector.extract_strided_slice %51 {offsets = [0, 0], sizes = [4, 5], strides = [1, 1]} : vector<24x5xf32> to vector<4x5xf32>
    %cst_78 = arith.constant dense<0.000000e+00> : vector<4x5xf32>
    %75 = tpu.matmul %73, %10, %cst_78 {dimension_numbers = #tpu.dot_dimension_numbers<[1], [0], [0], [1], [0, 0, 1, 1], [], []>} : vector<4x5xf32>, vector<5x5xf32>, vector<4x5xf32> -> vector<4x5xf32>
    %76 = arith.addf %74, %75 : vector<4x5xf32>
    %77 = arith.negf %76 : vector<4x5xf32>
    %78 = math.exp %77 : vector<4x5xf32>
    %cst_79 = arith.constant 1.000000e+00 : f32
    %79 = vector.broadcast %cst_79 : f32 to vector<4x5xf32>
    %80 = arith.addf %79, %78 : vector<4x5xf32>
    %81 = arith.divf %79, %80 : vector<4x5xf32>
    %82 = vector.extract_strided_slice %54 {offsets = [0, 0], sizes = [4, 5], strides = [1, 1]} : vector<24x5xf32> to vector<4x5xf32>
    %cst_80 = arith.constant dense<0.000000e+00> : vector<4x5xf32>
    %83 = tpu.matmul %73, %12, %cst_80 {dimension_numbers = #tpu.dot_dimension_numbers<[1], [0], [0], [1], [0, 0, 1, 1], [], []>} : vector<4x5xf32>, vector<5x5xf32>, vector<4x5xf32> -> vector<4x5xf32>
    %84 = arith.addf %82, %83 : vector<4x5xf32>
    %85 = arith.negf %84 : vector<4x5xf32>
    %86 = math.exp %85 : vector<4x5xf32>
    %cst_81 = arith.constant 1.000000e+00 : f32
    %87 = vector.broadcast %cst_81 : f32 to vector<4x5xf32>
    %88 = arith.addf %87, %86 : vector<4x5xf32>
    %89 = arith.divf %87, %88 : vector<4x5xf32>
    %90 = vector.extract_strided_slice %57 {offsets = [0, 0], sizes = [4, 5], strides = [1, 1]} : vector<24x5xf32> to vector<4x5xf32>
    %cst_82 = arith.constant dense<0.000000e+00> : vector<4x5xf32>
    %91 = tpu.matmul %73, %14, %cst_82 {dimension_numbers = #tpu.dot_dimension_numbers<[1], [0], [0], [1], [0, 0, 1, 1], [], []>} : vector<4x5xf32>, vector<5x5xf32>, vector<4x5xf32> -> vector<4x5xf32>
    %92 = arith.addf %90, %91 : vector<4x5xf32>
    %93 = math.tanh %92 : vector<4x5xf32>
    %94 = vector.extract_strided_slice %60 {offsets = [0, 0], sizes = [4, 5], strides = [1, 1]} : vector<24x5xf32> to vector<4x5xf32>
    %cst_83 = arith.constant dense<0.000000e+00> : vector<4x5xf32>
    %95 = tpu.matmul %73, %16, %cst_83 {dimension_numbers = #tpu.dot_dimension_numbers<[1], [0], [0], [1], [0, 0, 1, 1], [], []>} : vector<4x5xf32>, vector<5x5xf32>, vector<4x5xf32> -> vector<4x5xf32>
    %96 = arith.addf %94, %95 : vector<4x5xf32>
    %97 = arith.negf %96 : vector<4x5xf32>
    %98 = math.exp %97 : vector<4x5xf32>
    %cst_84 = arith.constant 1.000000e+00 : f32
    %99 = vector.broadcast %cst_84 : f32 to vector<4x5xf32>
    %100 = arith.addf %99, %98 : vector<4x5xf32>
    %101 = arith.divf %99, %100 : vector<4x5xf32>
    %102 = arith.mulf %89, %73 : vector<4x5xf32>
    %103 = arith.mulf %81, %93 : vector<4x5xf32>
    %104 = arith.addf %102, %103 : vector<4x5xf32>
    %105 = math.tanh %104 : vector<4x5xf32>
    %106 = arith.mulf %101, %105 : vector<4x5xf32>
    %107 = vector.extract_strided_slice %63 {offsets = [20, 0], sizes = [4, 5], strides = [1, 1]} : vector<24x5xf32> to vector<4x5xf32>
    %cst_85 = arith.constant dense<0.000000e+00> : vector<4x5xf32>
    %108 = tpu.matmul %73, %34, %cst_85 {dimension_numbers = #tpu.dot_dimension_numbers<[1], [0], [0], [1], [0, 0, 1, 1], [], []>} : vector<4x5xf32>, vector<5x5xf32>, vector<4x5xf32> -> vector<4x5xf32>
    %109 = arith.addf %107, %108 : vector<4x5xf32>
    %110 = arith.negf %109 : vector<4x5xf32>
    %111 = math.exp %110 : vector<4x5xf32>
    %cst_86 = arith.constant 1.000000e+00 : f32
    %112 = vector.broadcast %cst_86 : f32 to vector<4x5xf32>
    %113 = arith.addf %112, %111 : vector<4x5xf32>
    %114 = arith.divf %112, %113 : vector<4x5xf32>
    %115 = vector.extract_strided_slice %66 {offsets = [20, 0], sizes = [4, 5], strides = [1, 1]} : vector<24x5xf32> to vector<4x5xf32>
    %cst_87 = arith.constant dense<0.000000e+00> : vector<4x5xf32>
    %116 = tpu.matmul %73, %36, %cst_87 {dimension_numbers = #tpu.dot_dimension_numbers<[1], [0], [0], [1], [0, 0, 1, 1], [], []>} : vector<4x5xf32>, vector<5x5xf32>, vector<4x5xf32> -> vector<4x5xf32>
    %117 = arith.addf %115, %116 : vector<4x5xf32>
    %118 = arith.negf %117 : vector<4x5xf32>
    %119 = math.exp %118 : vector<4x5xf32>
    %cst_88 = arith.constant 1.000000e+00 : f32
    %120 = vector.broadcast %cst_88 : f32 to vector<4x5xf32>
    %121 = arith.addf %120, %119 : vector<4x5xf32>
    %122 = arith.divf %120, %121 : vector<4x5xf32>
    %123 = vector.extract_strided_slice %69 {offsets = [20, 0], sizes = [4, 5], strides = [1, 1]} : vector<24x5xf32> to vector<4x5xf32>
    %cst_89 = arith.constant dense<0.000000e+00> : vector<4x5xf32>
    %124 = tpu.matmul %73, %38, %cst_89 {dimension_numbers = #tpu.dot_dimension_numbers<[1], [0], [0], [1], [0, 0, 1, 1], [], []>} : vector<4x5xf32>, vector<5x5xf32>, vector<4x5xf32> -> vector<4x5xf32>
    %125 = arith.addf %123, %124 : vector<4x5xf32>
    %126 = math.tanh %125 : vector<4x5xf32>
    %127 = vector.extract_strided_slice %72 {offsets = [20, 0], sizes = [4, 5], strides = [1, 1]} : vector<24x5xf32> to vector<4x5xf32>
    %cst_90 = arith.constant dense<0.000000e+00> : vector<4x5xf32>
    %128 = tpu.matmul %73, %40, %cst_90 {dimension_numbers = #tpu.dot_dimension_numbers<[1], [0], [0], [1], [0, 0, 1, 1], [], []>} : vector<4x5xf32>, vector<5x5xf32>, vector<4x5xf32> -> vector<4x5xf32>
    %129 = arith.addf %127, %128 : vector<4x5xf32>
    %130 = arith.negf %129 : vector<4x5xf32>
    %131 = math.exp %130 : vector<4x5xf32>
    %cst_91 = arith.constant 1.000000e+00 : f32
    %132 = vector.broadcast %cst_91 : f32 to vector<4x5xf32>
    %133 = arith.addf %132, %131 : vector<4x5xf32>
    %134 = arith.divf %132, %133 : vector<4x5xf32>
    %135 = arith.mulf %122, %73 : vector<4x5xf32>
    %136 = arith.mulf %114, %126 : vector<4x5xf32>
    %137 = arith.addf %135, %136 : vector<4x5xf32>
    %138 = math.tanh %137 : vector<4x5xf32>
    %139 = arith.mulf %134, %138 : vector<4x5xf32>
    %140 = vector.extract_strided_slice %51 {offsets = [4, 0], sizes = [4, 5], strides = [1, 1]} : vector<24x5xf32> to vector<4x5xf32>
    %cst_92 = arith.constant dense<0.000000e+00> : vector<4x5xf32>
    %141 = tpu.matmul %106, %10, %cst_92 {dimension_numbers = #tpu.dot_dimension_numbers<[1], [0], [0], [1], [0, 0, 1, 1], [], []>} : vector<4x5xf32>, vector<5x5xf32>, vector<4x5xf32> -> vector<4x5xf32>
    %142 = arith.addf %140, %141 : vector<4x5xf32>
    %143 = arith.negf %142 : vector<4x5xf32>
    %144 = math.exp %143 : vector<4x5xf32>
    %cst_93 = arith.constant 1.000000e+00 : f32
    %145 = vector.broadcast %cst_93 : f32 to vector<4x5xf32>
    %146 = arith.addf %145, %144 : vector<4x5xf32>
    %147 = arith.divf %145, %146 : vector<4x5xf32>
    %148 = vector.extract_strided_slice %54 {offsets = [4, 0], sizes = [4, 5], strides = [1, 1]} : vector<24x5xf32> to vector<4x5xf32>
    %cst_94 = arith.constant dense<0.000000e+00> : vector<4x5xf32>
    %149 = tpu.matmul %106, %12, %cst_94 {dimension_numbers = #tpu.dot_dimension_numbers<[1], [0], [0], [1], [0, 0, 1, 1], [], []>} : vector<4x5xf32>, vector<5x5xf32>, vector<4x5xf32> -> vector<4x5xf32>
    %150 = arith.addf %148, %149 : vector<4x5xf32>
    %151 = arith.negf %150 : vector<4x5xf32>
    %152 = math.exp %151 : vector<4x5xf32>
    %cst_95 = arith.constant 1.000000e+00 : f32
    %153 = vector.broadcast %cst_95 : f32 to vector<4x5xf32>
    %154 = arith.addf %153, %152 : vector<4x5xf32>
    %155 = arith.divf %153, %154 : vector<4x5xf32>
    %156 = vector.extract_strided_slice %57 {offsets = [4, 0], sizes = [4, 5], strides = [1, 1]} : vector<24x5xf32> to vector<4x5xf32>
    %cst_96 = arith.constant dense<0.000000e+00> : vector<4x5xf32>
    %157 = tpu.matmul %106, %14, %cst_96 {dimension_numbers = #tpu.dot_dimension_numbers<[1], [0], [0], [1], [0, 0, 1, 1], [], []>} : vector<4x5xf32>, vector<5x5xf32>, vector<4x5xf32> -> vector<4x5xf32>
    %158 = arith.addf %156, %157 : vector<4x5xf32>
    %159 = math.tanh %158 : vector<4x5xf32>
    %160 = vector.extract_strided_slice %60 {offsets = [4, 0], sizes = [4, 5], strides = [1, 1]} : vector<24x5xf32> to vector<4x5xf32>
    %cst_97 = arith.constant dense<0.000000e+00> : vector<4x5xf32>
    %161 = tpu.matmul %106, %16, %cst_97 {dimension_numbers = #tpu.dot_dimension_numbers<[1], [0], [0], [1], [0, 0, 1, 1], [], []>} : vector<4x5xf32>, vector<5x5xf32>, vector<4x5xf32> -> vector<4x5xf32>
    %162 = arith.addf %160, %161 : vector<4x5xf32>
    %163 = arith.negf %162 : vector<4x5xf32>
    %164 = math.exp %163 : vector<4x5xf32>
    %cst_98 = arith.constant 1.000000e+00 : f32
    %165 = vector.broadcast %cst_98 : f32 to vector<4x5xf32>
    %166 = arith.addf %165, %164 : vector<4x5xf32>
    %167 = arith.divf %165, %166 : vector<4x5xf32>
    %168 = arith.mulf %155, %104 : vector<4x5xf32>
    %169 = arith.mulf %147, %159 : vector<4x5xf32>
    %170 = arith.addf %168, %169 : vector<4x5xf32>
    %171 = math.tanh %170 : vector<4x5xf32>
    %172 = arith.mulf %167, %171 : vector<4x5xf32>
    %173 = vector.extract_strided_slice %63 {offsets = [16, 0], sizes = [4, 5], strides = [1, 1]} : vector<24x5xf32> to vector<4x5xf32>
    %cst_99 = arith.constant dense<0.000000e+00> : vector<4x5xf32>
    %174 = tpu.matmul %139, %34, %cst_99 {dimension_numbers = #tpu.dot_dimension_numbers<[1], [0], [0], [1], [0, 0, 1, 1], [], []>} : vector<4x5xf32>, vector<5x5xf32>, vector<4x5xf32> -> vector<4x5xf32>
    %175 = arith.addf %173, %174 : vector<4x5xf32>
    %176 = arith.negf %175 : vector<4x5xf32>
    %177 = math.exp %176 : vector<4x5xf32>
    %cst_100 = arith.constant 1.000000e+00 : f32
    %178 = vector.broadcast %cst_100 : f32 to vector<4x5xf32>
    %179 = arith.addf %178, %177 : vector<4x5xf32>
    %180 = arith.divf %178, %179 : vector<4x5xf32>
    %181 = vector.extract_strided_slice %66 {offsets = [16, 0], sizes = [4, 5], strides = [1, 1]} : vector<24x5xf32> to vector<4x5xf32>
    %cst_101 = arith.constant dense<0.000000e+00> : vector<4x5xf32>
    %182 = tpu.matmul %139, %36, %cst_101 {dimension_numbers = #tpu.dot_dimension_numbers<[1], [0], [0], [1], [0, 0, 1, 1], [], []>} : vector<4x5xf32>, vector<5x5xf32>, vector<4x5xf32> -> vector<4x5xf32>
    %183 = arith.addf %181, %182 : vector<4x5xf32>
    %184 = arith.negf %183 : vector<4x5xf32>
    %185 = math.exp %184 : vector<4x5xf32>
    %cst_102 = arith.constant 1.000000e+00 : f32
    %186 = vector.broadcast %cst_102 : f32 to vector<4x5xf32>
    %187 = arith.addf %186, %185 : vector<4x5xf32>
    %188 = arith.divf %186, %187 : vector<4x5xf32>
    %189 = vector.extract_strided_slice %69 {offsets = [16, 0], sizes = [4, 5], strides = [1, 1]} : vector<24x5xf32> to vector<4x5xf32>
    %cst_103 = arith.constant dense<0.000000e+00> : vector<4x5xf32>
    %190 = tpu.matmul %139, %38, %cst_103 {dimension_numbers = #tpu.dot_dimension_numbers<[1], [0], [0], [1], [0, 0, 1, 1], [], []>} : vector<4x5xf32>, vector<5x5xf32>, vector<4x5xf32> -> vector<4x5xf32>
    %191 = arith.addf %189, %190 : vector<4x5xf32>
    %192 = math.tanh %191 : vector<4x5xf32>
    %193 = vector.extract_strided_slice %72 {offsets = [16, 0], sizes = [4, 5], strides = [1, 1]} : vector<24x5xf32> to vector<4x5xf32>
    %cst_104 = arith.constant dense<0.000000e+00> : vector<4x5xf32>
    %194 = tpu.matmul %139, %40, %cst_104 {dimension_numbers = #tpu.dot_dimension_numbers<[1], [0], [0], [1], [0, 0, 1, 1], [], []>} : vector<4x5xf32>, vector<5x5xf32>, vector<4x5xf32> -> vector<4x5xf32>
    %195 = arith.addf %193, %194 : vector<4x5xf32>
    %196 = arith.negf %195 : vector<4x5xf32>
    %197 = math.exp %196 : vector<4x5xf32>
    %cst_105 = arith.constant 1.000000e+00 : f32
    %198 = vector.broadcast %cst_105 : f32 to vector<4x5xf32>
    %199 = arith.addf %198, %197 : vector<4x5xf32>
    %200 = arith.divf %198, %199 : vector<4x5xf32>
    %201 = arith.mulf %188, %137 : vector<4x5xf32>
    %202 = arith.mulf %180, %192 : vector<4x5xf32>
    %203 = arith.addf %201, %202 : vector<4x5xf32>
    %204 = math.tanh %203 : vector<4x5xf32>
    %205 = arith.mulf %200, %204 : vector<4x5xf32>
    %206 = vector.extract_strided_slice %51 {offsets = [8, 0], sizes = [4, 5], strides = [1, 1]} : vector<24x5xf32> to vector<4x5xf32>
    %cst_106 = arith.constant dense<0.000000e+00> : vector<4x5xf32>
    %207 = tpu.matmul %172, %10, %cst_106 {dimension_numbers = #tpu.dot_dimension_numbers<[1], [0], [0], [1], [0, 0, 1, 1], [], []>} : vector<4x5xf32>, vector<5x5xf32>, vector<4x5xf32> -> vector<4x5xf32>
    %208 = arith.addf %206, %207 : vector<4x5xf32>
    %209 = arith.negf %208 : vector<4x5xf32>
    %210 = math.exp %209 : vector<4x5xf32>
    %cst_107 = arith.constant 1.000000e+00 : f32
    %211 = vector.broadcast %cst_107 : f32 to vector<4x5xf32>
    %212 = arith.addf %211, %210 : vector<4x5xf32>
    %213 = arith.divf %211, %212 : vector<4x5xf32>
    %214 = vector.extract_strided_slice %54 {offsets = [8, 0], sizes = [4, 5], strides = [1, 1]} : vector<24x5xf32> to vector<4x5xf32>
    %cst_108 = arith.constant dense<0.000000e+00> : vector<4x5xf32>
    %215 = tpu.matmul %172, %12, %cst_108 {dimension_numbers = #tpu.dot_dimension_numbers<[1], [0], [0], [1], [0, 0, 1, 1], [], []>} : vector<4x5xf32>, vector<5x5xf32>, vector<4x5xf32> -> vector<4x5xf32>
    %216 = arith.addf %214, %215 : vector<4x5xf32>
    %217 = arith.negf %216 : vector<4x5xf32>
    %218 = math.exp %217 : vector<4x5xf32>
    %cst_109 = arith.constant 1.000000e+00 : f32
    %219 = vector.broadcast %cst_109 : f32 to vector<4x5xf32>
    %220 = arith.addf %219, %218 : vector<4x5xf32>
    %221 = arith.divf %219, %220 : vector<4x5xf32>
    %222 = vector.extract_strided_slice %57 {offsets = [8, 0], sizes = [4, 5], strides = [1, 1]} : vector<24x5xf32> to vector<4x5xf32>
    %cst_110 = arith.constant dense<0.000000e+00> : vector<4x5xf32>
    %223 = tpu.matmul %172, %14, %cst_110 {dimension_numbers = #tpu.dot_dimension_numbers<[1], [0], [0], [1], [0, 0, 1, 1], [], []>} : vector<4x5xf32>, vector<5x5xf32>, vector<4x5xf32> -> vector<4x5xf32>
    %224 = arith.addf %222, %223 : vector<4x5xf32>
    %225 = math.tanh %224 : vector<4x5xf32>
    %226 = vector.extract_strided_slice %60 {offsets = [8, 0], sizes = [4, 5], strides = [1, 1]} : vector<24x5xf32> to vector<4x5xf32>
    %cst_111 = arith.constant dense<0.000000e+00> : vector<4x5xf32>
    %227 = tpu.matmul %172, %16, %cst_111 {dimension_numbers = #tpu.dot_dimension_numbers<[1], [0], [0], [1], [0, 0, 1, 1], [], []>} : vector<4x5xf32>, vector<5x5xf32>, vector<4x5xf32> -> vector<4x5xf32>
    %228 = arith.addf %226, %227 : vector<4x5xf32>
    %229 = arith.negf %228 : vector<4x5xf32>
    %230 = math.exp %229 : vector<4x5xf32>
    %cst_112 = arith.constant 1.000000e+00 : f32
    %231 = vector.broadcast %cst_112 : f32 to vector<4x5xf32>
    %232 = arith.addf %231, %230 : vector<4x5xf32>
    %233 = arith.divf %231, %232 : vector<4x5xf32>
    %234 = arith.mulf %221, %170 : vector<4x5xf32>
    %235 = arith.mulf %213, %225 : vector<4x5xf32>
    %236 = arith.addf %234, %235 : vector<4x5xf32>
    %237 = math.tanh %236 : vector<4x5xf32>
    %238 = arith.mulf %233, %237 : vector<4x5xf32>
    %239 = vector.extract_strided_slice %63 {offsets = [12, 0], sizes = [4, 5], strides = [1, 1]} : vector<24x5xf32> to vector<4x5xf32>
    %cst_113 = arith.constant dense<0.000000e+00> : vector<4x5xf32>
    %240 = tpu.matmul %205, %34, %cst_113 {dimension_numbers = #tpu.dot_dimension_numbers<[1], [0], [0], [1], [0, 0, 1, 1], [], []>} : vector<4x5xf32>, vector<5x5xf32>, vector<4x5xf32> -> vector<4x5xf32>
    %241 = arith.addf %239, %240 : vector<4x5xf32>
    %242 = arith.negf %241 : vector<4x5xf32>
    %243 = math.exp %242 : vector<4x5xf32>
    %cst_114 = arith.constant 1.000000e+00 : f32
    %244 = vector.broadcast %cst_114 : f32 to vector<4x5xf32>
    %245 = arith.addf %244, %243 : vector<4x5xf32>
    %246 = arith.divf %244, %245 : vector<4x5xf32>
    %247 = vector.extract_strided_slice %66 {offsets = [12, 0], sizes = [4, 5], strides = [1, 1]} : vector<24x5xf32> to vector<4x5xf32>
    %cst_115 = arith.constant dense<0.000000e+00> : vector<4x5xf32>
    %248 = tpu.matmul %205, %36, %cst_115 {dimension_numbers = #tpu.dot_dimension_numbers<[1], [0], [0], [1], [0, 0, 1, 1], [], []>} : vector<4x5xf32>, vector<5x5xf32>, vector<4x5xf32> -> vector<4x5xf32>
    %249 = arith.addf %247, %248 : vector<4x5xf32>
    %250 = arith.negf %249 : vector<4x5xf32>
    %251 = math.exp %250 : vector<4x5xf32>
    %cst_116 = arith.constant 1.000000e+00 : f32
    %252 = vector.broadcast %cst_116 : f32 to vector<4x5xf32>
    %253 = arith.addf %252, %251 : vector<4x5xf32>
    %254 = arith.divf %252, %253 : vector<4x5xf32>
    %255 = vector.extract_strided_slice %69 {offsets = [12, 0], sizes = [4, 5], strides = [1, 1]} : vector<24x5xf32> to vector<4x5xf32>
    %cst_117 = arith.constant dense<0.000000e+00> : vector<4x5xf32>
    %256 = tpu.matmul %205, %38, %cst_117 {dimension_numbers = #tpu.dot_dimension_numbers<[1], [0], [0], [1], [0, 0, 1, 1], [], []>} : vector<4x5xf32>, vector<5x5xf32>, vector<4x5xf32> -> vector<4x5xf32>
    %257 = arith.addf %255, %256 : vector<4x5xf32>
    %258 = math.tanh %257 : vector<4x5xf32>
    %259 = vector.extract_strided_slice %72 {offsets = [12, 0], sizes = [4, 5], strides = [1, 1]} : vector<24x5xf32> to vector<4x5xf32>
    %cst_118 = arith.constant dense<0.000000e+00> : vector<4x5xf32>
    %260 = tpu.matmul %205, %40, %cst_118 {dimension_numbers = #tpu.dot_dimension_numbers<[1], [0], [0], [1], [0, 0, 1, 1], [], []>} : vector<4x5xf32>, vector<5x5xf32>, vector<4x5xf32> -> vector<4x5xf32>
    %261 = arith.addf %259, %260 : vector<4x5xf32>
    %262 = arith.negf %261 : vector<4x5xf32>
    %263 = math.exp %262 : vector<4x5xf32>
    %cst_119 = arith.constant 1.000000e+00 : f32
    %264 = vector.broadcast %cst_119 : f32 to vector<4x5xf32>
    %265 = arith.addf %264, %263 : vector<4x5xf32>
    %266 = arith.divf %264, %265 : vector<4x5xf32>
    %267 = arith.mulf %254, %203 : vector<4x5xf32>
    %268 = arith.mulf %246, %258 : vector<4x5xf32>
    %269 = arith.addf %267, %268 : vector<4x5xf32>
    %270 = math.tanh %269 : vector<4x5xf32>
    %271 = arith.mulf %266, %270 : vector<4x5xf32>
    %272 = vector.extract_strided_slice %51 {offsets = [12, 0], sizes = [4, 5], strides = [1, 1]} : vector<24x5xf32> to vector<4x5xf32>
    %cst_120 = arith.constant dense<0.000000e+00> : vector<4x5xf32>
    %273 = tpu.matmul %238, %10, %cst_120 {dimension_numbers = #tpu.dot_dimension_numbers<[1], [0], [0], [1], [0, 0, 1, 1], [], []>} : vector<4x5xf32>, vector<5x5xf32>, vector<4x5xf32> -> vector<4x5xf32>
    %274 = arith.addf %272, %273 : vector<4x5xf32>
    %275 = arith.negf %274 : vector<4x5xf32>
    %276 = math.exp %275 : vector<4x5xf32>
    %cst_121 = arith.constant 1.000000e+00 : f32
    %277 = vector.broadcast %cst_121 : f32 to vector<4x5xf32>
    %278 = arith.addf %277, %276 : vector<4x5xf32>
    %279 = arith.divf %277, %278 : vector<4x5xf32>
    %280 = vector.extract_strided_slice %54 {offsets = [12, 0], sizes = [4, 5], strides = [1, 1]} : vector<24x5xf32> to vector<4x5xf32>
    %cst_122 = arith.constant dense<0.000000e+00> : vector<4x5xf32>
    %281 = tpu.matmul %238, %12, %cst_122 {dimension_numbers = #tpu.dot_dimension_numbers<[1], [0], [0], [1], [0, 0, 1, 1], [], []>} : vector<4x5xf32>, vector<5x5xf32>, vector<4x5xf32> -> vector<4x5xf32>
    %282 = arith.addf %280, %281 : vector<4x5xf32>
    %283 = arith.negf %282 : vector<4x5xf32>
    %284 = math.exp %283 : vector<4x5xf32>
    %cst_123 = arith.constant 1.000000e+00 : f32
    %285 = vector.broadcast %cst_123 : f32 to vector<4x5xf32>
    %286 = arith.addf %285, %284 : vector<4x5xf32>
    %287 = arith.divf %285, %286 : vector<4x5xf32>
    %288 = vector.extract_strided_slice %57 {offsets = [12, 0], sizes = [4, 5], strides = [1, 1]} : vector<24x5xf32> to vector<4x5xf32>
    %cst_124 = arith.constant dense<0.000000e+00> : vector<4x5xf32>
    %289 = tpu.matmul %238, %14, %cst_124 {dimension_numbers = #tpu.dot_dimension_numbers<[1], [0], [0], [1], [0, 0, 1, 1], [], []>} : vector<4x5xf32>, vector<5x5xf32>, vector<4x5xf32> -> vector<4x5xf32>
    %290 = arith.addf %288, %289 : vector<4x5xf32>
    %291 = math.tanh %290 : vector<4x5xf32>
    %292 = vector.extract_strided_slice %60 {offsets = [12, 0], sizes = [4, 5], strides = [1, 1]} : vector<24x5xf32> to vector<4x5xf32>
    %cst_125 = arith.constant dense<0.000000e+00> : vector<4x5xf32>
    %293 = tpu.matmul %238, %16, %cst_125 {dimension_numbers = #tpu.dot_dimension_numbers<[1], [0], [0], [1], [0, 0, 1, 1], [], []>} : vector<4x5xf32>, vector<5x5xf32>, vector<4x5xf32> -> vector<4x5xf32>
    %294 = arith.addf %292, %293 : vector<4x5xf32>
    %295 = arith.negf %294 : vector<4x5xf32>
    %296 = math.exp %295 : vector<4x5xf32>
    %cst_126 = arith.constant 1.000000e+00 : f32
    %297 = vector.broadcast %cst_126 : f32 to vector<4x5xf32>
    %298 = arith.addf %297, %296 : vector<4x5xf32>
    %299 = arith.divf %297, %298 : vector<4x5xf32>
    %300 = arith.mulf %287, %236 : vector<4x5xf32>
    %301 = arith.mulf %279, %291 : vector<4x5xf32>
    %302 = arith.addf %300, %301 : vector<4x5xf32>
    %303 = math.tanh %302 : vector<4x5xf32>
    %304 = arith.mulf %299, %303 : vector<4x5xf32>
    %305 = vector.extract_strided_slice %63 {offsets = [8, 0], sizes = [4, 5], strides = [1, 1]} : vector<24x5xf32> to vector<4x5xf32>
    %cst_127 = arith.constant dense<0.000000e+00> : vector<4x5xf32>
    %306 = tpu.matmul %271, %34, %cst_127 {dimension_numbers = #tpu.dot_dimension_numbers<[1], [0], [0], [1], [0, 0, 1, 1], [], []>} : vector<4x5xf32>, vector<5x5xf32>, vector<4x5xf32> -> vector<4x5xf32>
    %307 = arith.addf %305, %306 : vector<4x5xf32>
    %308 = arith.negf %307 : vector<4x5xf32>
    %309 = math.exp %308 : vector<4x5xf32>
    %cst_128 = arith.constant 1.000000e+00 : f32
    %310 = vector.broadcast %cst_128 : f32 to vector<4x5xf32>
    %311 = arith.addf %310, %309 : vector<4x5xf32>
    %312 = arith.divf %310, %311 : vector<4x5xf32>
    %313 = vector.extract_strided_slice %66 {offsets = [8, 0], sizes = [4, 5], strides = [1, 1]} : vector<24x5xf32> to vector<4x5xf32>
    %cst_129 = arith.constant dense<0.000000e+00> : vector<4x5xf32>
    %314 = tpu.matmul %271, %36, %cst_129 {dimension_numbers = #tpu.dot_dimension_numbers<[1], [0], [0], [1], [0, 0, 1, 1], [], []>} : vector<4x5xf32>, vector<5x5xf32>, vector<4x5xf32> -> vector<4x5xf32>
    %315 = arith.addf %313, %314 : vector<4x5xf32>
    %316 = arith.negf %315 : vector<4x5xf32>
    %317 = math.exp %316 : vector<4x5xf32>
    %cst_130 = arith.constant 1.000000e+00 : f32
    %318 = vector.broadcast %cst_130 : f32 to vector<4x5xf32>
    %319 = arith.addf %318, %317 : vector<4x5xf32>
    %320 = arith.divf %318, %319 : vector<4x5xf32>
    %321 = vector.extract_strided_slice %69 {offsets = [8, 0], sizes = [4, 5], strides = [1, 1]} : vector<24x5xf32> to vector<4x5xf32>
    %cst_131 = arith.constant dense<0.000000e+00> : vector<4x5xf32>
    %322 = tpu.matmul %271, %38, %cst_131 {dimension_numbers = #tpu.dot_dimension_numbers<[1], [0], [0], [1], [0, 0, 1, 1], [], []>} : vector<4x5xf32>, vector<5x5xf32>, vector<4x5xf32> -> vector<4x5xf32>
    %323 = arith.addf %321, %322 : vector<4x5xf32>
    %324 = math.tanh %323 : vector<4x5xf32>
    %325 = vector.extract_strided_slice %72 {offsets = [8, 0], sizes = [4, 5], strides = [1, 1]} : vector<24x5xf32> to vector<4x5xf32>
    %cst_132 = arith.constant dense<0.000000e+00> : vector<4x5xf32>
    %326 = tpu.matmul %271, %40, %cst_132 {dimension_numbers = #tpu.dot_dimension_numbers<[1], [0], [0], [1], [0, 0, 1, 1], [], []>} : vector<4x5xf32>, vector<5x5xf32>, vector<4x5xf32> -> vector<4x5xf32>
    %327 = arith.addf %325, %326 : vector<4x5xf32>
    %328 = arith.negf %327 : vector<4x5xf32>
    %329 = math.exp %328 : vector<4x5xf32>
    %cst_133 = arith.constant 1.000000e+00 : f32
    %330 = vector.broadcast %cst_133 : f32 to vector<4x5xf32>
    %331 = arith.addf %330, %329 : vector<4x5xf32>
    %332 = arith.divf %330, %331 : vector<4x5xf32>
    %333 = arith.mulf %320, %269 : vector<4x5xf32>
    %334 = arith.mulf %312, %324 : vector<4x5xf32>
    %335 = arith.addf %333, %334 : vector<4x5xf32>
    %336 = math.tanh %335 : vector<4x5xf32>
    %337 = arith.mulf %332, %336 : vector<4x5xf32>
    %338 = vector.extract_strided_slice %51 {offsets = [16, 0], sizes = [4, 5], strides = [1, 1]} : vector<24x5xf32> to vector<4x5xf32>
    %cst_134 = arith.constant dense<0.000000e+00> : vector<4x5xf32>
    %339 = tpu.matmul %304, %10, %cst_134 {dimension_numbers = #tpu.dot_dimension_numbers<[1], [0], [0], [1], [0, 0, 1, 1], [], []>} : vector<4x5xf32>, vector<5x5xf32>, vector<4x5xf32> -> vector<4x5xf32>
    %340 = arith.addf %338, %339 : vector<4x5xf32>
    %341 = arith.negf %340 : vector<4x5xf32>
    %342 = math.exp %341 : vector<4x5xf32>
    %cst_135 = arith.constant 1.000000e+00 : f32
    %343 = vector.broadcast %cst_135 : f32 to vector<4x5xf32>
    %344 = arith.addf %343, %342 : vector<4x5xf32>
    %345 = arith.divf %343, %344 : vector<4x5xf32>
    %346 = vector.extract_strided_slice %54 {offsets = [16, 0], sizes = [4, 5], strides = [1, 1]} : vector<24x5xf32> to vector<4x5xf32>
    %cst_136 = arith.constant dense<0.000000e+00> : vector<4x5xf32>
    %347 = tpu.matmul %304, %12, %cst_136 {dimension_numbers = #tpu.dot_dimension_numbers<[1], [0], [0], [1], [0, 0, 1, 1], [], []>} : vector<4x5xf32>, vector<5x5xf32>, vector<4x5xf32> -> vector<4x5xf32>
    %348 = arith.addf %346, %347 : vector<4x5xf32>
    %349 = arith.negf %348 : vector<4x5xf32>
    %350 = math.exp %349 : vector<4x5xf32>
    %cst_137 = arith.constant 1.000000e+00 : f32
    %351 = vector.broadcast %cst_137 : f32 to vector<4x5xf32>
    %352 = arith.addf %351, %350 : vector<4x5xf32>
    %353 = arith.divf %351, %352 : vector<4x5xf32>
    %354 = vector.extract_strided_slice %57 {offsets = [16, 0], sizes = [4, 5], strides = [1, 1]} : vector<24x5xf32> to vector<4x5xf32>
    %cst_138 = arith.constant dense<0.000000e+00> : vector<4x5xf32>
    %355 = tpu.matmul %304, %14, %cst_138 {dimension_numbers = #tpu.dot_dimension_numbers<[1], [0], [0], [1], [0, 0, 1, 1], [], []>} : vector<4x5xf32>, vector<5x5xf32>, vector<4x5xf32> -> vector<4x5xf32>
    %356 = arith.addf %354, %355 : vector<4x5xf32>
    %357 = math.tanh %356 : vector<4x5xf32>
    %358 = vector.extract_strided_slice %60 {offsets = [16, 0], sizes = [4, 5], strides = [1, 1]} : vector<24x5xf32> to vector<4x5xf32>
    %cst_139 = arith.constant dense<0.000000e+00> : vector<4x5xf32>
    %359 = tpu.matmul %304, %16, %cst_139 {dimension_numbers = #tpu.dot_dimension_numbers<[1], [0], [0], [1], [0, 0, 1, 1], [], []>} : vector<4x5xf32>, vector<5x5xf32>, vector<4x5xf32> -> vector<4x5xf32>
    %360 = arith.addf %358, %359 : vector<4x5xf32>
    %361 = arith.negf %360 : vector<4x5xf32>
    %362 = math.exp %361 : vector<4x5xf32>
    %cst_140 = arith.constant 1.000000e+00 : f32
    %363 = vector.broadcast %cst_140 : f32 to vector<4x5xf32>
    %364 = arith.addf %363, %362 : vector<4x5xf32>
    %365 = arith.divf %363, %364 : vector<4x5xf32>
    %366 = arith.mulf %353, %302 : vector<4x5xf32>
    %367 = arith.mulf %345, %357 : vector<4x5xf32>
    %368 = arith.addf %366, %367 : vector<4x5xf32>
    %369 = math.tanh %368 : vector<4x5xf32>
    %370 = arith.mulf %365, %369 : vector<4x5xf32>
    %371 = vector.extract_strided_slice %63 {offsets = [4, 0], sizes = [4, 5], strides = [1, 1]} : vector<24x5xf32> to vector<4x5xf32>
    %cst_141 = arith.constant dense<0.000000e+00> : vector<4x5xf32>
    %372 = tpu.matmul %337, %34, %cst_141 {dimension_numbers = #tpu.dot_dimension_numbers<[1], [0], [0], [1], [0, 0, 1, 1], [], []>} : vector<4x5xf32>, vector<5x5xf32>, vector<4x5xf32> -> vector<4x5xf32>
    %373 = arith.addf %371, %372 : vector<4x5xf32>
    %374 = arith.negf %373 : vector<4x5xf32>
    %375 = math.exp %374 : vector<4x5xf32>
    %cst_142 = arith.constant 1.000000e+00 : f32
    %376 = vector.broadcast %cst_142 : f32 to vector<4x5xf32>
    %377 = arith.addf %376, %375 : vector<4x5xf32>
    %378 = arith.divf %376, %377 : vector<4x5xf32>
    %379 = vector.extract_strided_slice %66 {offsets = [4, 0], sizes = [4, 5], strides = [1, 1]} : vector<24x5xf32> to vector<4x5xf32>
    %cst_143 = arith.constant dense<0.000000e+00> : vector<4x5xf32>
    %380 = tpu.matmul %337, %36, %cst_143 {dimension_numbers = #tpu.dot_dimension_numbers<[1], [0], [0], [1], [0, 0, 1, 1], [], []>} : vector<4x5xf32>, vector<5x5xf32>, vector<4x5xf32> -> vector<4x5xf32>
    %381 = arith.addf %379, %380 : vector<4x5xf32>
    %382 = arith.negf %381 : vector<4x5xf32>
    %383 = math.exp %382 : vector<4x5xf32>
    %cst_144 = arith.constant 1.000000e+00 : f32
    %384 = vector.broadcast %cst_144 : f32 to vector<4x5xf32>
    %385 = arith.addf %384, %383 : vector<4x5xf32>
    %386 = arith.divf %384, %385 : vector<4x5xf32>
    %387 = vector.extract_strided_slice %69 {offsets = [4, 0], sizes = [4, 5], strides = [1, 1]} : vector<24x5xf32> to vector<4x5xf32>
    %cst_145 = arith.constant dense<0.000000e+00> : vector<4x5xf32>
    %388 = tpu.matmul %337, %38, %cst_145 {dimension_numbers = #tpu.dot_dimension_numbers<[1], [0], [0], [1], [0, 0, 1, 1], [], []>} : vector<4x5xf32>, vector<5x5xf32>, vector<4x5xf32> -> vector<4x5xf32>
    %389 = arith.addf %387, %388 : vector<4x5xf32>
    %390 = math.tanh %389 : vector<4x5xf32>
    %391 = vector.extract_strided_slice %72 {offsets = [4, 0], sizes = [4, 5], strides = [1, 1]} : vector<24x5xf32> to vector<4x5xf32>
    %cst_146 = arith.constant dense<0.000000e+00> : vector<4x5xf32>
    %392 = tpu.matmul %337, %40, %cst_146 {dimension_numbers = #tpu.dot_dimension_numbers<[1], [0], [0], [1], [0, 0, 1, 1], [], []>} : vector<4x5xf32>, vector<5x5xf32>, vector<4x5xf32> -> vector<4x5xf32>
    %393 = arith.addf %391, %392 : vector<4x5xf32>
    %394 = arith.negf %393 : vector<4x5xf32>
    %395 = math.exp %394 : vector<4x5xf32>
    %cst_147 = arith.constant 1.000000e+00 : f32
    %396 = vector.broadcast %cst_147 : f32 to vector<4x5xf32>
    %397 = arith.addf %396, %395 : vector<4x5xf32>
    %398 = arith.divf %396, %397 : vector<4x5xf32>
    %399 = arith.mulf %386, %335 : vector<4x5xf32>
    %400 = arith.mulf %378, %390 : vector<4x5xf32>
    %401 = arith.addf %399, %400 : vector<4x5xf32>
    %402 = math.tanh %401 : vector<4x5xf32>
    %403 = arith.mulf %398, %402 : vector<4x5xf32>
    %404 = vector.extract_strided_slice %51 {offsets = [20, 0], sizes = [4, 5], strides = [1, 1]} : vector<24x5xf32> to vector<4x5xf32>
    %cst_148 = arith.constant dense<0.000000e+00> : vector<4x5xf32>
    %405 = tpu.matmul %370, %10, %cst_148 {dimension_numbers = #tpu.dot_dimension_numbers<[1], [0], [0], [1], [0, 0, 1, 1], [], []>} : vector<4x5xf32>, vector<5x5xf32>, vector<4x5xf32> -> vector<4x5xf32>
    %406 = arith.addf %404, %405 : vector<4x5xf32>
    %407 = arith.negf %406 : vector<4x5xf32>
    %408 = math.exp %407 : vector<4x5xf32>
    %cst_149 = arith.constant 1.000000e+00 : f32
    %409 = vector.broadcast %cst_149 : f32 to vector<4x5xf32>
    %410 = arith.addf %409, %408 : vector<4x5xf32>
    %411 = arith.divf %409, %410 : vector<4x5xf32>
    %412 = vector.extract_strided_slice %54 {offsets = [20, 0], sizes = [4, 5], strides = [1, 1]} : vector<24x5xf32> to vector<4x5xf32>
    %cst_150 = arith.constant dense<0.000000e+00> : vector<4x5xf32>
    %413 = tpu.matmul %370, %12, %cst_150 {dimension_numbers = #tpu.dot_dimension_numbers<[1], [0], [0], [1], [0, 0, 1, 1], [], []>} : vector<4x5xf32>, vector<5x5xf32>, vector<4x5xf32> -> vector<4x5xf32>
    %414 = arith.addf %412, %413 : vector<4x5xf32>
    %415 = arith.negf %414 : vector<4x5xf32>
    %416 = math.exp %415 : vector<4x5xf32>
    %cst_151 = arith.constant 1.000000e+00 : f32
    %417 = vector.broadcast %cst_151 : f32 to vector<4x5xf32>
    %418 = arith.addf %417, %416 : vector<4x5xf32>
    %419 = arith.divf %417, %418 : vector<4x5xf32>
    %420 = vector.extract_strided_slice %57 {offsets = [20, 0], sizes = [4, 5], strides = [1, 1]} : vector<24x5xf32> to vector<4x5xf32>
    %cst_152 = arith.constant dense<0.000000e+00> : vector<4x5xf32>
    %421 = tpu.matmul %370, %14, %cst_152 {dimension_numbers = #tpu.dot_dimension_numbers<[1], [0], [0], [1], [0, 0, 1, 1], [], []>} : vector<4x5xf32>, vector<5x5xf32>, vector<4x5xf32> -> vector<4x5xf32>
    %422 = arith.addf %420, %421 : vector<4x5xf32>
    %423 = math.tanh %422 : vector<4x5xf32>
    %424 = vector.extract_strided_slice %60 {offsets = [20, 0], sizes = [4, 5], strides = [1, 1]} : vector<24x5xf32> to vector<4x5xf32>
    %cst_153 = arith.constant dense<0.000000e+00> : vector<4x5xf32>
    %425 = tpu.matmul %370, %16, %cst_153 {dimension_numbers = #tpu.dot_dimension_numbers<[1], [0], [0], [1], [0, 0, 1, 1], [], []>} : vector<4x5xf32>, vector<5x5xf32>, vector<4x5xf32> -> vector<4x5xf32>
    %426 = arith.addf %424, %425 : vector<4x5xf32>
    %427 = arith.negf %426 : vector<4x5xf32>
    %428 = math.exp %427 : vector<4x5xf32>
    %cst_154 = arith.constant 1.000000e+00 : f32
    %429 = vector.broadcast %cst_154 : f32 to vector<4x5xf32>
    %430 = arith.addf %429, %428 : vector<4x5xf32>
    %431 = arith.divf %429, %430 : vector<4x5xf32>
    %432 = arith.mulf %419, %368 : vector<4x5xf32>
    %433 = arith.mulf %411, %423 : vector<4x5xf32>
    %434 = arith.addf %432, %433 : vector<4x5xf32>
    %435 = math.tanh %434 : vector<4x5xf32>
    %436 = arith.mulf %431, %435 : vector<4x5xf32>
    %437 = vector.extract_strided_slice %63 {offsets = [0, 0], sizes = [4, 5], strides = [1, 1]} : vector<24x5xf32> to vector<4x5xf32>
    %cst_155 = arith.constant dense<0.000000e+00> : vector<4x5xf32>
    %438 = tpu.matmul %403, %34, %cst_155 {dimension_numbers = #tpu.dot_dimension_numbers<[1], [0], [0], [1], [0, 0, 1, 1], [], []>} : vector<4x5xf32>, vector<5x5xf32>, vector<4x5xf32> -> vector<4x5xf32>
    %439 = arith.addf %437, %438 : vector<4x5xf32>
    %440 = arith.negf %439 : vector<4x5xf32>
    %441 = math.exp %440 : vector<4x5xf32>
    %cst_156 = arith.constant 1.000000e+00 : f32
    %442 = vector.broadcast %cst_156 : f32 to vector<4x5xf32>
    %443 = arith.addf %442, %441 : vector<4x5xf32>
    %444 = arith.divf %442, %443 : vector<4x5xf32>
    %445 = vector.extract_strided_slice %66 {offsets = [0, 0], sizes = [4, 5], strides = [1, 1]} : vector<24x5xf32> to vector<4x5xf32>
    %cst_157 = arith.constant dense<0.000000e+00> : vector<4x5xf32>
    %446 = tpu.matmul %403, %36, %cst_157 {dimension_numbers = #tpu.dot_dimension_numbers<[1], [0], [0], [1], [0, 0, 1, 1], [], []>} : vector<4x5xf32>, vector<5x5xf32>, vector<4x5xf32> -> vector<4x5xf32>
    %447 = arith.addf %445, %446 : vector<4x5xf32>
    %448 = arith.negf %447 : vector<4x5xf32>
    %449 = math.exp %448 : vector<4x5xf32>
    %cst_158 = arith.constant 1.000000e+00 : f32
    %450 = vector.broadcast %cst_158 : f32 to vector<4x5xf32>
    %451 = arith.addf %450, %449 : vector<4x5xf32>
    %452 = arith.divf %450, %451 : vector<4x5xf32>
    %453 = vector.extract_strided_slice %69 {offsets = [0, 0], sizes = [4, 5], strides = [1, 1]} : vector<24x5xf32> to vector<4x5xf32>
    %cst_159 = arith.constant dense<0.000000e+00> : vector<4x5xf32>
    %454 = tpu.matmul %403, %38, %cst_159 {dimension_numbers = #tpu.dot_dimension_numbers<[1], [0], [0], [1], [0, 0, 1, 1], [], []>} : vector<4x5xf32>, vector<5x5xf32>, vector<4x5xf32> -> vector<4x5xf32>
    %455 = arith.addf %453, %454 : vector<4x5xf32>
    %456 = math.tanh %455 : vector<4x5xf32>
    %457 = vector.extract_strided_slice %72 {offsets = [0, 0], sizes = [4, 5], strides = [1, 1]} : vector<24x5xf32> to vector<4x5xf32>
    %cst_160 = arith.constant dense<0.000000e+00> : vector<4x5xf32>
    %458 = tpu.matmul %403, %40, %cst_160 {dimension_numbers = #tpu.dot_dimension_numbers<[1], [0], [0], [1], [0, 0, 1, 1], [], []>} : vector<4x5xf32>, vector<5x5xf32>, vector<4x5xf32> -> vector<4x5xf32>
    %459 = arith.addf %457, %458 : vector<4x5xf32>
    %460 = arith.negf %459 : vector<4x5xf32>
    %461 = math.exp %460 : vector<4x5xf32>
    %cst_161 = arith.constant 1.000000e+00 : f32
    %462 = vector.broadcast %cst_161 : f32 to vector<4x5xf32>
    %463 = arith.addf %462, %461 : vector<4x5xf32>
    %464 = arith.divf %462, %463 : vector<4x5xf32>
    %465 = arith.mulf %452, %401 : vector<4x5xf32>
    %466 = arith.mulf %444, %456 : vector<4x5xf32>
    %467 = arith.addf %465, %466 : vector<4x5xf32>
    %468 = math.tanh %467 : vector<4x5xf32>
    %469 = arith.mulf %464, %468 : vector<4x5xf32>
    %470 = vector.extract_strided_slice %436 {offsets = [0, 0], sizes = [1, 5], strides = [1, 1]} : vector<4x5xf32> to vector<1x5xf32>
    %471 = vector.extract_strided_slice %436 {offsets = [1, 0], sizes = [1, 5], strides = [1, 1]} : vector<4x5xf32> to vector<1x5xf32>
    %472 = vector.extract_strided_slice %436 {offsets = [2, 0], sizes = [1, 5], strides = [1, 1]} : vector<4x5xf32> to vector<1x5xf32>
    %473 = vector.extract_strided_slice %436 {offsets = [3, 0], sizes = [1, 5], strides = [1, 1]} : vector<4x5xf32> to vector<1x5xf32>
    %474 = vector.extract_strided_slice %469 {offsets = [0, 0], sizes = [1, 5], strides = [1, 1]} : vector<4x5xf32> to vector<1x5xf32>
    %475 = vector.extract_strided_slice %469 {offsets = [1, 0], sizes = [1, 5], strides = [1, 1]} : vector<4x5xf32> to vector<1x5xf32>
    %476 = vector.extract_strided_slice %469 {offsets = [2, 0], sizes = [1, 5], strides = [1, 1]} : vector<4x5xf32> to vector<1x5xf32>
    %477 = vector.extract_strided_slice %469 {offsets = [3, 0], sizes = [1, 5], strides = [1, 1]} : vector<4x5xf32> to vector<1x5xf32>
    %478 = tpu.concatenate %470, %472, %474, %476 in 0 : vector<1x5xf32>, vector<1x5xf32>, vector<1x5xf32>, vector<1x5xf32> -> vector<4x5xf32>
    %479 = tpu.concatenate %471, %473, %475, %477 in 0 : vector<1x5xf32>, vector<1x5xf32>, vector<1x5xf32>, vector<1x5xf32> -> vector<4x5xf32>
    %480 = arith.mulf %106, %478 : vector<4x5xf32>
    %481 = arith.mulf %469, %479 : vector<4x5xf32>
    %482 = arith.addf %480, %481 : vector<4x5xf32>
    %cst_162 = arith.constant dense<0.000000e+00> : vector<4xf32>
    %483 = vector.multi_reduction <add>, %482, %cst_162 [1] : vector<4x5xf32> to vector<4xf32>
    %484 = vector.shape_cast %483 : vector<4xf32> to vector<4x1xf32>
    %485 = arith.mulf %172, %478 : vector<4x5xf32>
    %486 = arith.mulf %403, %479 : vector<4x5xf32>
    %487 = arith.addf %485, %486 : vector<4x5xf32>
    %cst_163 = arith.constant dense<0.000000e+00> : vector<4xf32>
    %488 = vector.multi_reduction <add>, %487, %cst_163 [1] : vector<4x5xf32> to vector<4xf32>
    %489 = vector.shape_cast %488 : vector<4xf32> to vector<4x1xf32>
    %490 = arith.mulf %238, %478 : vector<4x5xf32>
    %491 = arith.mulf %337, %479 : vector<4x5xf32>
    %492 = arith.addf %490, %491 : vector<4x5xf32>
    %cst_164 = arith.constant dense<0.000000e+00> : vector<4xf32>
    %493 = vector.multi_reduction <add>, %492, %cst_164 [1] : vector<4x5xf32> to vector<4xf32>
    %494 = vector.shape_cast %493 : vector<4xf32> to vector<4x1xf32>
    %495 = arith.mulf %304, %478 : vector<4x5xf32>
    %496 = arith.mulf %271, %479 : vector<4x5xf32>
    %497 = arith.addf %495, %496 : vector<4x5xf32>
    %cst_165 = arith.constant dense<0.000000e+00> : vector<4xf32>
    %498 = vector.multi_reduction <add>, %497, %cst_165 [1] : vector<4x5xf32> to vector<4xf32>
    %499 = vector.shape_cast %498 : vector<4xf32> to vector<4x1xf32>
    %500 = arith.mulf %370, %478 : vector<4x5xf32>
    %501 = arith.mulf %205, %479 : vector<4x5xf32>
    %502 = arith.addf %500, %501 : vector<4x5xf32>
    %cst_166 = arith.constant dense<0.000000e+00> : vector<4xf32>
    %503 = vector.multi_reduction <add>, %502, %cst_166 [1] : vector<4x5xf32> to vector<4xf32>
    %504 = vector.shape_cast %503 : vector<4xf32> to vector<4x1xf32>
    %505 = arith.mulf %436, %478 : vector<4x5xf32>
    %506 = arith.mulf %139, %479 : vector<4x5xf32>
    %507 = arith.addf %505, %506 : vector<4x5xf32>
    %cst_167 = arith.constant dense<0.000000e+00> : vector<4xf32>
    %508 = vector.multi_reduction <add>, %507, %cst_167 [1] : vector<4x5xf32> to vector<4xf32>
    %509 = vector.shape_cast %508 : vector<4xf32> to vector<4x1xf32>
    %510 = arith.maximumf %484, %489 : vector<4x1xf32>
    %511 = arith.maximumf %510, %494 : vector<4x1xf32>
    %512 = arith.maximumf %511, %499 : vector<4x1xf32>
    %513 = arith.maximumf %512, %504 : vector<4x1xf32>
    %514 = arith.maximumf %513, %509 : vector<4x1xf32>
    %515 = arith.subf %484, %514 : vector<4x1xf32>
    %516 = math.exp %515 : vector<4x1xf32>
    %517 = arith.subf %489, %514 : vector<4x1xf32>
    %518 = math.exp %517 : vector<4x1xf32>
    %519 = arith.subf %494, %514 : vector<4x1xf32>
    %520 = math.exp %519 : vector<4x1xf32>
    %521 = arith.subf %499, %514 : vector<4x1xf32>
    %522 = math.exp %521 : vector<4x1xf32>
    %523 = arith.subf %504, %514 : vector<4x1xf32>
    %524 = math.exp %523 : vector<4x1xf32>
    %525 = arith.subf %509, %514 : vector<4x1xf32>
    %526 = math.exp %525 : vector<4x1xf32>
    %527 = arith.addf %516, %518 : vector<4x1xf32>
    %528 = arith.addf %527, %520 : vector<4x1xf32>
    %529 = arith.addf %528, %522 : vector<4x1xf32>
    %530 = arith.addf %529, %524 : vector<4x1xf32>
    %531 = arith.addf %530, %526 : vector<4x1xf32>
    %cst_168 = arith.constant 1.000000e+00 : f32
    %532 = vector.broadcast %cst_168 : f32 to vector<4x1xf32>
    %533 = arith.divf %532, %531 : vector<4x1xf32>
    %534 = arith.mulf %516, %533 : vector<4x1xf32>
    %535 = arith.mulf %518, %533 : vector<4x1xf32>
    %536 = arith.mulf %520, %533 : vector<4x1xf32>
    %537 = arith.mulf %522, %533 : vector<4x1xf32>
    %538 = arith.mulf %524, %533 : vector<4x1xf32>
    %539 = arith.mulf %526, %533 : vector<4x1xf32>
    %540 = vector.broadcast %534 : vector<4x1xf32> to vector<4x5xf32>
    %541 = arith.mulf %540, %106 : vector<4x5xf32>
    %542 = vector.broadcast %534 : vector<4x1xf32> to vector<4x5xf32>
    %543 = arith.mulf %542, %469 : vector<4x5xf32>
    %544 = vector.broadcast %535 : vector<4x1xf32> to vector<4x5xf32>
    %545 = arith.mulf %544, %172 : vector<4x5xf32>
    %546 = arith.addf %541, %545 : vector<4x5xf32>
    %547 = vector.broadcast %535 : vector<4x1xf32> to vector<4x5xf32>
    %548 = arith.mulf %547, %403 : vector<4x5xf32>
    %549 = arith.addf %543, %548 : vector<4x5xf32>
    %550 = vector.broadcast %536 : vector<4x1xf32> to vector<4x5xf32>
    %551 = arith.mulf %550, %238 : vector<4x5xf32>
    %552 = arith.addf %546, %551 : vector<4x5xf32>
    %553 = vector.broadcast %536 : vector<4x1xf32> to vector<4x5xf32>
    %554 = arith.mulf %553, %337 : vector<4x5xf32>
    %555 = arith.addf %549, %554 : vector<4x5xf32>
    %556 = vector.broadcast %537 : vector<4x1xf32> to vector<4x5xf32>
    %557 = arith.mulf %556, %304 : vector<4x5xf32>
    %558 = arith.addf %552, %557 : vector<4x5xf32>
    %559 = vector.broadcast %537 : vector<4x1xf32> to vector<4x5xf32>
    %560 = arith.mulf %559, %271 : vector<4x5xf32>
    %561 = arith.addf %555, %560 : vector<4x5xf32>
    %562 = vector.broadcast %538 : vector<4x1xf32> to vector<4x5xf32>
    %563 = arith.mulf %562, %370 : vector<4x5xf32>
    %564 = arith.addf %558, %563 : vector<4x5xf32>
    %565 = vector.broadcast %538 : vector<4x1xf32> to vector<4x5xf32>
    %566 = arith.mulf %565, %205 : vector<4x5xf32>
    %567 = arith.addf %561, %566 : vector<4x5xf32>
    %568 = vector.broadcast %539 : vector<4x1xf32> to vector<4x5xf32>
    %569 = arith.mulf %568, %436 : vector<4x5xf32>
    %570 = arith.addf %564, %569 : vector<4x5xf32>
    %571 = vector.broadcast %539 : vector<4x1xf32> to vector<4x5xf32>
    %572 = arith.mulf %571, %139 : vector<4x5xf32>
    %573 = arith.addf %567, %572 : vector<4x5xf32>
    %c0_169 = arith.constant 0 : index
    %c0_170 = arith.constant 0 : index
    %574 = vector.load %arg7[%c0_169, %c0_170] : memref<5x2xf32, #tpu.memory_space<vmem>>, vector<5x2xf32>
    %cst_171 = arith.constant dense<0.000000e+00> : vector<4x2xf32>
    %575 = tpu.matmul %570, %574, %cst_171 {dimension_numbers = #tpu.dot_dimension_numbers<[1], [0], [0], [1], [0, 0, 1, 1], [], []>} : vector<4x5xf32>, vector<5x2xf32>, vector<4x2xf32> -> vector<4x2xf32>
    %c0_172 = arith.constant 0 : index
    %c0_173 = arith.constant 0 : index
    %576 = vector.load %arg8[%c0_172, %c0_173] : memref<5x2xf32, #tpu.memory_space<vmem>>, vector<5x2xf32>
    %cst_174 = arith.constant dense<0.000000e+00> : vector<4x2xf32>
    %577 = tpu.matmul %573, %576, %cst_174 {dimension_numbers = #tpu.dot_dimension_numbers<[1], [0], [0], [1], [0, 0, 1, 1], [], []>} : vector<4x5xf32>, vector<5x2xf32>, vector<4x2xf32> -> vector<4x2xf32>
    %578 = arith.addf %575, %577 : vector<4x2xf32>
    %c0_175 = arith.constant 0 : index
    %c0_176 = arith.constant 0 : index
    %579 = vector.load %arg9[%c0_175, %c0_176] : memref<1x2xf32, #tpu.memory_space<vmem>>, vector<1x2xf32>
    %580 = vector.broadcast %579 : vector<1x2xf32> to vector<4x2xf32>
    %581 = arith.addf %578, %580 : vector<4x2xf32>
    %c0_177 = arith.constant 0 : index
    %c0_178 = arith.constant 0 : index
    %582 = vector.load %arg10[%c0_177, %c0_178] : memref<4x2xf32, #tpu.memory_space<vmem>>, vector<4x2xf32>
    tpu.vector_store %arg10[%c0_177, %c0_178], %581 {strides = array<i32>} : memref<4x2xf32, #tpu.memory_space<vmem>>, vector<4x2xf32>,
    %583 = tpu.concatenate %534, %535, %536, %537, %538, %539 in 1 : vector<4x1xf32>, vector<4x1xf32>, vector<4x1xf32>, vector<4x1xf32>, vector<4x1xf32>, vector<4x1xf32> -> vector<4x6xf32>
    %c0_179 = arith.constant 0 : index
    %c0_180 = arith.constant 0 : index
    %584 = vector.load %arg11[%c0_179, %c0_180] : memref<4x6xf32, #tpu.memory_space<vmem>>, vector<4x6xf32>
    tpu.vector_store %arg11[%c0_179, %c0_180], %583 {strides = array<i32>} : memref<4x6xf32, #tpu.memory_space<vmem>>, vector<4x6xf32>,
    return
  }
}

</mosaic_0001>

<bundles_post_ra>
// kernel: bilstm_attention_forward.1
= control target key start
LH: loop header
LB: loop body
LE: loop exit
PB: predicated region body
PF: predicated region fallthrough
CT: control target
= control target key end

     0   :  { %vm99_vm0 = vcmask 1041408   ;;  %v5978_v1 = vmov 0.0   ;;  %vm89_vm1 = vcmask 15360   ;;  %vm5979_vm2 = vmmov 0   ;;  %s6869_s0 = inlined_call_operand.vmem [shape: f32[24,2], index: 0, kind: input, shape index: {}]   ;;  %s6870_s1 = inlined_call_operand.vmem [shape: f32[4,2,5], index: 1, kind: input, shape index: {}]   ;;  %s6871_s2 = inlined_call_operand.vmem [shape: f32[4,5,5], index: 2, kind: input, shape index: {}]   ;;  %s6872_s3 = inlined_call_operand.vmem [shape: f32[4,1,5], index: 3, kind: input, shape index: {}]   ;;  %s6873_s4 = inlined_call_operand.vmem [shape: f32[4,2,5], index: 4, kind: input, shape index: {}]   ;;  %s6874_s5 = inlined_call_operand.vmem [shape: f32[4,5,5], index: 5, kind: input, shape index: {}]   ;;  %s6875_s6 = inlined_call_operand.vmem [shape: f32[4,1,5], index: 6, kind: input, shape index: {}]   ;;  %s6876_s7 = inlined_call_operand.vmem [shape: f32[5,2], index: 7, kind: input, shape index: {}]   ;;  %s6877_s8 = inlined_call_operand.vmem [shape: f32[5,2], index: 8, kind: input, shape index: {}]   ;;  %s6878_s9 = inlined_call_operand.vmem [shape: f32[1,2], index: 9, kind: input, shape index: {}]   ;;  %s6879_s10 = inlined_call_operand.vmem [shape: f32[4,2], index: 10, kind: output, shape index: {0}]   ;;  %s6880_s11 = inlined_call_operand.hbm [shape: f32[4,6], index: 11, kind: output, shape index: {1}]  }
   0x1   :  { %v41_v0 = vld [vmem:[%s6870_s1] sm:$0x3]  ;;  %5391 = vmatprep.subr.mxu0 %v5978_v1  ;;  %5402 = vmatprep.subr.mxu1 %v5978_v1  ;;  %v5072_v2 = vld [vmem:[%s6870_s1 + $0x2] sm:$0x3]  ;;  %v5073_v4 = vld [vmem:[%s6870_s1 + $0x4] sm:$0x3] }
   0x2   :  { %v6058_v3 = vld [vmem:[%s6869_s0] sm:$0xff]  ;;  %5392 = vmatpush3.msk.msra.mxu0 %vm99_vm0, %v41_v0  ;;  %5393 = vmatprep.mubr.msk.f32.mxu0 %vm5979_vm2, %v5978_v1  ;;  %v6081_v6 = vld [vmem:[%s6869_s0 + $0x8] sm:$0xff] }
   0x3   :  { %5403 = vmatpush3.msk.msra.mxu1 %vm99_vm0, %v5072_v2  ;;  %5404 = vmatprep.mubr.msk.f32.mxu1 %vm5979_vm2, %v5978_v1  ;;  %v5074_v5 = vld [vmem:[%s6870_s1 + $0x6] sm:$0x3] }
   0x4   :  { %5394 = vmatmul.mubr.msk.f32.vlgmr.msra.gmra.mrb[0].mxu0 %vm89_vm1, %v6058_v3  ;;  %5405 = vmatmul.mubr.msk.f32.vlgmr.msra.gmra.mrb[0].mxu1 %vm89_vm1, %v6058_v3 }
   0x5   :  { %5413 = vmatprep.subr.mxu0 %v5978_v1  ;;  %5424 = vmatprep.subr.mxu1 %v5978_v1 }
   0x6   :  { %5414 = vmatpush3.msk.msra.mxu0 %vm99_vm0, %v5073_v4  ;;  %5425 = vmatpush3.msk.msra.mxu1 %vm99_vm0, %v5074_v5 }
   0x7   :  { %5396 = vmatprep.mubr.msk.f32.mxu0 %vm5979_vm2, %v5978_v1  ;;  %5407 = vmatprep.mubr.msk.f32.mxu1 %vm5979_vm2, %v5978_v1 }
   0x8   :  { %17 = vsyncpa [#allocation3], 0  ;;  %5397 = vmatmul.mubr.msk.f32.gmra.mrb[2].mxu0 %vm89_vm1, %v6081_v6  ;;  %5408 = vmatmul.mubr.msk.f32.gmra.mrb[2].mxu1 %vm89_vm1, %v6081_v6  ;;  %v40_v7 = vld [vmem:[%s6869_s0 + $0x10] sm:$0xff]  ;;  %v62_v8 = vld [vmem:[%s6873_s4] sm:$0x3]  ;;  %vm810_vm3 = vcmask 1044480  }
   0x9   :  { %5399 = vmatprep.mubr.msk.f32.mxu0 %vm5979_vm2, %v5978_v1  ;;  %5410 = vmatprep.mubr.msk.f32.mxu1 %vm5979_vm2, %v5978_v1  ;;  %v5081_v9 = vld [vmem:[%s6873_s4 + $0x2] sm:$0x3]  ;;  %v5082_v10 = vld [vmem:[%s6873_s4 + $0x4] sm:$0x3]  ;;  %v5083_v11 = vld [vmem:[%s6873_s4 + $0x6] sm:$0x3] }
   0xa   :  { %5435 = vmatprep.subr.mxu0 %v5978_v1  ;;  %5446 = vmatprep.subr.mxu1 %v5978_v1  ;;  %v6175_v12 = vld [vmem:[%s6871_s2] sm:$0x1f]  ;;  %v6180_v13 = vld [vmem:[%s6871_s2 + $0x8] sm:$0x1f]  ;;  %v6213_v14 = vld [vmem:[%s6871_s2 + $0x10] sm:$0x1f] }
   0xb   :  { %v6218_v15 = vld [vmem:[%s6871_s2 + $0x18] sm:$0x1f]  ;;  %v6233_v16 = vld [vmem:[%s6874_s5] sm:$0x1f]  ;;  %v6238_v17 = vld [vmem:[%s6874_s5 + $0x8] sm:$0x1f] }
   0xc   :  { %5400 = vmatmul.mubr.msk.f32.gmra.mrb[4].mxu0 %vm89_vm1, %v40_v7  ;;  %5411 = vmatmul.mubr.msk.f32.gmra.mrb[4].mxu1 %vm89_vm1, %v40_v7  ;;  %v6255_v18 = vld [vmem:[%s6874_s5 + $0x10] sm:$0x1f]  ;;  %v6262_v19 = vld [vmem:[%s6874_s5 + $0x18] sm:$0x1f]  ;;  %v6295_v24 = vld [vmem:[%s6872_s3] ss:$0 sm:$0xff] }
   0xd   :  { %5415 = vmatprep.mubr.msk.f32.mxu0 %vm5979_vm2, %v5978_v1  ;;  %5426 = vmatprep.mubr.msk.f32.mxu1 %vm5979_vm2, %v5978_v1  ;;  %v6300_v25 = vld [vmem:[%s6872_s3 + $0x1] ss:$0 sm:$0xff]  ;;  %v6321_v42 = vld [vmem:[%s6872_s3 + $0x2] ss:$0 sm:$0xff]  ;;  %v5105_v43 = vld [vmem:[%s6872_s3 + $0x3] ss:$0 sm:$0xff] }
   0xe   :  { %v5110_v56 = vld [vmem:[%s6875_s6] ss:$0 sm:$0xff]  ;;  %v5115_v57 = vld [vmem:[%s6875_s6 + $0x1] ss:$0 sm:$0xff]  ;;  %vm806_vm4 = vcmask 39936   ;;  %vm4678_vm5 = vcmask 1040384  }
   0xf   :  { %vm4681_vm6 = vcmask 1042432   ;;  %vm4691_vm7 = vcmask 35840   ;;  %vm4704_vm8 = vcmask 39940   ;;  %s5982_s18 = smov 2   ;;  %s5983_s22 = smov 1   ;;  %vm5044_vm9 = vcmask 7168  }
  0x10   :  { %5416 = vmatmul.mubr.msk.f32.vlgmr.msra.gmra.mrb[6].mxu0 %vm89_vm1, %v6058_v3  ;;  %5427 = vmatmul.mubr.msk.f32.vlgmr.msra.gmra.mrb[6].mxu1 %vm89_vm1, %v6058_v3  ;;  %s5984_s23 = smov 3   ;;  %s5985_s24 = smov 5   ;;  %vm5047_vm10 = vcmask 23552   ;;  %vm5049_vm11 = vcmask 31744   ;;  %vm5052_vm12 = vcmask 44032  }
  0x11   :  { %5436 = vmatpush3.msk.msra.mxu0 %vm99_vm0, %v62_v8  ;;  %5447 = vmatpush3.msk.msra.mxu1 %vm99_vm0, %v5081_v9 }
  0x12   :  { %5418 = vmatprep.mubr.msk.f32.mxu0 %vm5979_vm2, %v5978_v1  ;;  %5429 = vmatprep.mubr.msk.f32.mxu1 %vm5979_vm2, %v5978_v1 }
  0x13   :  { %5457 = vmatprep.subr.mxu0 %v5978_v1  ;;  %5468 = vmatprep.subr.mxu1 %v5978_v1 }
  0x14   :  { %5419 = vmatmul.mubr.msk.f32.gmra.mrb[8].mxu0 %vm89_vm1, %v6081_v6  ;;  %5430 = vmatmul.mubr.msk.f32.gmra.mrb[8].mxu1 %vm89_vm1, %v6081_v6 }
  0x15   :  { %5421 = vmatprep.mubr.msk.f32.mxu0 %vm5979_vm2, %v5978_v1  ;;  %5432 = vmatprep.mubr.msk.f32.mxu1 %vm5979_vm2, %v5978_v1 }
  0x18   :  { %5422 = vmatmul.mubr.msk.f32.gmra.mrb[10].mxu0 %vm89_vm1, %v40_v7  ;;  %5433 = vmatmul.mubr.msk.f32.gmra.mrb[10].mxu1 %vm89_vm1, %v40_v7 }
  0x19   :  { %5437 = vmatprep.mubr.msk.f32.mxu0 %vm5979_vm2, %v5978_v1  ;;  %5448 = vmatprep.mubr.msk.f32.mxu1 %vm5979_vm2, %v5978_v1 }
  0x1c   :  { %5438 = vmatmul.mubr.msk.f32.vlgmr.msra.gmra.mrb[12].mxu0 %vm89_vm1, %v6058_v3  ;;  %5449 = vmatmul.mubr.msk.f32.vlgmr.msra.gmra.mrb[12].mxu1 %vm89_vm1, %v6058_v3 }
  0x1d   :  { %5458 = vmatpush3.msk.msra.mxu0 %vm99_vm0, %v5082_v10  ;;  %5469 = vmatpush3.msk.msra.mxu1 %vm99_vm0, %v5083_v11  ;;  %v6353_v11 = vld [vmem:[%s6875_s6 + $0x2] ss:$0 sm:$0xff] }
  0x1e   :  { %5440 = vmatprep.mubr.msk.f32.mxu0 %vm5979_vm2, %v5978_v1  ;;  %5451 = vmatprep.mubr.msk.f32.mxu1 %vm5979_vm2, %v5978_v1 }
  0x1f   :  { %5479 = vmatprep.subr.mxu0 %v5978_v1  ;;  %5484 = vmatprep.subr.mxu1 %v5978_v1 }
  0x20   :  { %5441 = vmatmul.mubr.msk.f32.gmra.mrb[14].mxu0 %vm89_vm1, %v6081_v6  ;;  %5452 = vmatmul.mubr.msk.f32.gmra.mrb[14].mxu1 %vm89_vm1, %v6081_v6 }
  0x21   :  { %5443 = vmatprep.mubr.msk.f32.mxu0 %vm5979_vm2, %v5978_v1  ;;  %5454 = vmatprep.mubr.msk.f32.mxu1 %vm5979_vm2, %v5978_v1 }
  0x24   :  { %5444 = vmatmul.mubr.msk.f32.gmra.mrb[16].mxu0 %vm89_vm1, %v40_v7  ;;  %5455 = vmatmul.mubr.msk.f32.gmra.mrb[16].mxu1 %vm89_vm1, %v40_v7 }
  0x25   :  { %5459 = vmatprep.mubr.msk.f32.mxu0 %vm5979_vm2, %v5978_v1  ;;  %5470 = vmatprep.mubr.msk.f32.mxu1 %vm5979_vm2, %v5978_v1 }
  0x28   :  { %5460 = vmatmul.mubr.msk.f32.vlgmr.msra.gmra.mrb[18].mxu0 %vm89_vm1, %v6058_v3  ;;  %5471 = vmatmul.mubr.msk.f32.vlgmr.msra.gmra.mrb[18].mxu1 %vm89_vm1, %v6058_v3 }
  0x29   :  { %5480 = vmatpush3.msk.msra.mxu0 %vm810_vm3, %v6175_v12  ;;  %5485 = vmatpush3.msk.msra.mxu1 %vm810_vm3, %v6180_v13 }
  0x2a   :  { %5462 = vmatprep.mubr.msk.f32.mxu0 %vm5979_vm2, %v5978_v1  ;;  %5473 = vmatprep.mubr.msk.f32.mxu1 %vm5979_vm2, %v5978_v1 }
  0x2b   :  { %5489 = vmatprep.subr.mxu0 %v5978_v1  ;;  %5494 = vmatprep.subr.mxu1 %v5978_v1 }
  0x2c   :  { %5463 = vmatmul.mubr.msk.f32.gmra.mrb[20].mxu0 %vm89_vm1, %v6081_v6  ;;  %5474 = vmatmul.mubr.msk.f32.gmra.mrb[20].mxu1 %vm89_vm1, %v6081_v6 }
  0x2d   :  { %5465 = vmatprep.mubr.msk.f32.mxu0 %vm5979_vm2, %v5978_v1  ;;  %5476 = vmatprep.mubr.msk.f32.mxu1 %vm5979_vm2, %v5978_v1 }
  0x30   :  { %5466 = vmatmul.mubr.msk.f32.gmra.mrb[22].mxu0 %vm89_vm1, %v40_v7  ;;  %5477 = vmatmul.mubr.msk.f32.gmra.mrb[22].mxu1 %vm89_vm1, %v40_v7 }
  0x31   :  { %5481 = vmatprep.mubr.msk.f32.mxu0 %vm5979_vm2, %v5978_v1  ;;  %5486 = vmatprep.mubr.msk.f32.mxu1 %vm5979_vm2, %v5978_v1 }
  0x34   :  { %5482 = vmatmul.mubr.f32.vlgmr.msra.gmra.mrb[24].mxu0 %v5978_v1  ;;  %5487 = vmatmul.mubr.f32.vlgmr.msra.gmra.mrb[24].mxu1 %v5978_v1 }
  0x35   :  { %5490 = vmatpush3.msk.msra.mxu0 %vm810_vm3, %v6213_v14  ;;  %5495 = vmatpush3.msk.msra.mxu1 %vm810_vm3, %v6218_v15 }
  0x36   :  { %5491 = vmatprep.mubr.msk.f32.mxu0 %vm5979_vm2, %v5978_v1  ;;  %5496 = vmatprep.mubr.msk.f32.mxu1 %vm5979_vm2, %v5978_v1 }
  0x37   :  { %5499 = vmatprep.subr.mxu0 %v5978_v1  ;;  %5504 = vmatprep.subr.mxu1 %v5978_v1 }
  0x38   :  { %5492 = vmatmul.mubr.f32.vlgmr.msra.gmra.mrb[26].mxu0 %v5978_v1  ;;  %5497 = vmatmul.mubr.f32.vlgmr.msra.gmra.mrb[26].mxu1 %v5978_v1 }
  0x39   :  { %5500 = vmatpush3.msk.msra.mxu0 %vm810_vm3, %v6233_v16  ;;  %5505 = vmatpush3.msk.msra.mxu1 %vm810_vm3, %v6238_v17 }
  0x3a   :  { %5501 = vmatprep.mubr.msk.f32.mxu0 %vm5979_vm2, %v5978_v1  ;;  %5506 = vmatprep.mubr.msk.f32.mxu1 %vm5979_vm2, %v5978_v1 }
  0x3b   :  { %5509 = vmatprep.subr.mxu0 %v5978_v1  ;;  %5514 = vmatprep.subr.mxu1 %v5978_v1 }
  0x3c   :  { %5502 = vmatmul.mubr.f32.vlgmr.msra.gmra.mrb[28].mxu0 %v5978_v1  ;;  %5507 = vmatmul.mubr.f32.vlgmr.msra.gmra.mrb[28].mxu1 %v5978_v1 }
  0x3d   :  { %5510 = vmatpush3.msk.msra.mxu0 %vm810_vm3, %v6255_v18  ;;  %5511 = vmatprep.mubr.msk.f32.mxu0 %vm5979_vm2, %v5978_v1 }
  0x3e   :  { %5515 = vmatpush3.msk.msra.mxu1 %vm810_vm3, %v6262_v19  ;;  %5516 = vmatprep.mubr.msk.f32.mxu1 %vm5979_vm2, %v5978_v1 }
  0x3f   :  { %5519 = vmatprep.subr.mxu0 %v5978_v1  ;;  %5524 = vmatprep.subr.mxu1 %v5978_v1 }
  0x40   :  { %5512 = vmatmul.mubr.f32.vlgmr.msra.gmra.mrb[30].mxu0 %v5978_v1  ;;  %5517 = vmatmul.mubr.f32.vlgmr.msra.gmra.mrb[30].mxu1 %v5978_v1 }
  0x41   :  { %5520 = vmatpush3.msk.msra.mxu0 %vm810_vm3, %v6175_v12  ;;  %5525 = vmatpush3.msk.msra.mxu1 %vm810_vm3, %v6180_v13 }
  0x42   :  { %5521 = vmatprep.mubr.msk.f32.mxu0 %vm5979_vm2, %v5978_v1  ;;  %5526 = vmatprep.mubr.msk.f32.mxu1 %vm5979_vm2, %v5978_v1 }
  0x43   :  { %5529 = vmatprep.subr.mxu0 %v5978_v1  ;;  %5534 = vmatprep.subr.mxu1 %v5978_v1 }
  0xd7   :  { %v6288_v20 = vpop.f32.mrb[0].mxu0  ;;  %v6290_v21 = vpop.f32.mrb[0].mxu1 }
  0xd8   :  { %v5395_v22 = vpop.f32.mrb[1].mxu0  ;;  %v5406_v23 = vpop.f32.mrb[1].mxu1 }
  0xd9   :  { %v5125_v22 = vld [vmem:[%s6875_s6 + $0x3] ss:$0 sm:$0xff] }
  0xdb   :  { %v174_v26 = vpop.f32.mrb[2].mxu0  ;;  %v263_v27 = vpop.f32.mrb[2].mxu1 }
  0xdc   :  { %v6303_v28 = vadd.f32 %v6295_v24, %v174_v26  ;;  %v6306_v29 = vadd.f32 %v6300_v25, %v263_v27  ;;  %v5398_v30 = vpop.f32.mrb[3].mxu0  ;;  %v5409_v31 = vpop.f32.mrb[3].mxu1 }
  0xdf   :  { %v179_v32 = vpop.f32.mrb[4].mxu0  ;;  %v268_v33 = vpop.f32.mrb[4].mxu1 }
  0xe0   :  { %v6309_v34 = vadd.f32 %v6295_v24, %v179_v32  ;;  %v6312_v35 = vadd.f32 %v6300_v25, %v268_v33  ;;  %v5401_v36 = vpop.f32.mrb[5].mxu0  ;;  %v5412_v37 = vpop.f32.mrb[5].mxu1 }
  0xe3   :  { %v6314_v38 = vpop.f32.mrb[6].mxu0  ;;  %v6316_v39 = vpop.f32.mrb[6].mxu1 }
  0xe4   :  { %v5417_v40 = vpop.f32.mrb[7].mxu0  ;;  %v5428_v41 = vpop.f32.mrb[7].mxu1 }
  0xe7   :  { %v352_v44 = vpop.f32.mrb[8].mxu0  ;;  %v441_v45 = vpop.f32.mrb[8].mxu1 }
  0xe8   :  { %v6327_v46 = vadd.f32 %v6321_v42, %v352_v44  ;;  %v6329_v47 = vadd.f32 %v5105_v43, %v441_v45  ;;  %v5420_v48 = vpop.f32.mrb[9].mxu0  ;;  %v5431_v49 = vpop.f32.mrb[9].mxu1 }
  0xeb   :  { %v357_v50 = vpop.f32.mrb[10].mxu0  ;;  %v446_v51 = vpop.f32.mrb[10].mxu1 }
  0xec   :  { %v6332_v52 = vadd.f32 %v6321_v42, %v357_v50  ;;  %v6334_v53 = vadd.f32 %v5105_v43, %v446_v51  ;;  %v5423_v54 = vpop.f32.mrb[11].mxu0  ;;  %v5434_v55 = vpop.f32.mrb[11].mxu1  ;;  %v6370_v51 = vadd.f32 %v6295_v24, %v6288_v20 }
  0xed   :  { %v6374_v54 = vadd.f32 %v6300_v25, %v6290_v21 }
  0xef   :  { %v525_v58 = vpop.f32.mrb[12].mxu0  ;;  %v614_v59 = vpop.f32.mrb[12].mxu1 }
  0xf0   :  { %v6342_v60 = vadd.f32 %v5110_v56, %v525_v58  ;;  %v6344_v61 = vadd.f32 %v5115_v57, %v614_v59  ;;  %v5439_v62 = vpop.f32.mrb[13].mxu0  ;;  %v5450_v63 = vpop.f32.mrb[13].mxu1 }
  0xf3   :  { %v530_v0 = vpop.f32.mrb[14].mxu0  ;;  %v619_v2 = vpop.f32.mrb[14].mxu1 }
  0xf4   :  { %v6346_v3 = vadd.f32 %v5110_v56, %v530_v0  ;;  %v6348_v4 = vadd.f32 %v5115_v57, %v619_v2  ;;  %v5442_v5 = vpop.f32.mrb[15].mxu0  ;;  %v5453_v6 = vpop.f32.mrb[15].mxu1 }
  0xf5   :  { %v6379_v6 = vadd.f32 %v5105_v43, %v6316_v39  ;;  %v6388_v43 = vadd.f32 %v6321_v42, %v6314_v38 }
  0xf7   :  { %v535_v7 = vpop.f32.mrb[16].mxu0  ;;  %v624_v8 = vpop.f32.mrb[16].mxu1 }
  0xf8   :  { %v5445_v9 = vpop.f32.mrb[17].mxu0  ;;  %v5456_v10 = vpop.f32.mrb[17].mxu1 }
  0xfb   :  { %v703_v23 = vpop.f32.mrb[18].mxu0  ;;  %v792_v26 = vpop.f32.mrb[18].mxu1 }
  0xfc   :  { %v6359_v27 = vadd.f32 %v6353_v11, %v703_v23  ;;  %v6361_v30 = vadd.f32 %v5125_v22, %v792_v26  ;;  %v5461_v31 = vpop.f32.mrb[19].mxu0  ;;  %v5472_v32 = vpop.f32.mrb[19].mxu1  ;;  %v6382_v26 = vadd.f32 %v5110_v56, %v535_v7 }
  0xfd   :  { %v6384_v31 = vadd.f32 %v5115_v57, %v624_v8 }
  0xff   :  { %v708_v33 = vpop.f32.mrb[20].mxu0  ;;  %v797_v36 = vpop.f32.mrb[20].mxu1 }
 0x100   :  { %v6364_v37 = vadd.f32 %v6353_v11, %v708_v33  ;;  %v6366_v40 = vadd.f32 %v5125_v22, %v797_v36  ;;  %v5464_v41 = vpop.f32.mrb[21].mxu0  ;;  %v5475_v44 = vpop.f32.mrb[21].mxu1 }
 0x103   :  { %v713_v45 = vpop.f32.mrb[22].mxu0  ;;  %v802_v48 = vpop.f32.mrb[22].mxu1 }
 0x104   :  { %v5467_v49 = vpop.f32.mrb[23].mxu0  ;;  %v5478_v50 = vpop.f32.mrb[23].mxu1 }
 0x107   :  { %v880_v55 = vpop.f32.mrb[24].mxu0  ;;  %v960_v58 = vpop.f32.mrb[24].mxu1 }
 0x108   :  { %v884_v59 = vadd.f32 %v880_v55, %v6370_v51  ;;  %v964_v62 = vadd.f32 %v960_v58, %v6374_v54  ;;  %v5483_v63 = vpop.f32.mrb[25].mxu0  ;;  %v5488_v0 = vpop.f32.mrb[25].mxu1 }
 0x109   :  { %v6393_v0 = vadd.f32 %v5125_v22, %v802_v48 }
 0x10a   :  { %v5131_v2 = vmul.f32 -1.442695, %v884_v59  ;;  %v5133_v5 = vmul.f32 -1.442695, %v964_v62 }
 0x10b   :  { %v1040_v9 = vpop.f32.mrb[26].mxu0  ;;  %v1115_v20 = vpop.f32.mrb[26].mxu1 }
 0x10c   :  { %5740 = vpow2.f32 %v5131_v2  ;;  %v5493_v24 = vpop.f32.mrb[27].mxu0  ;;  %v5498_v10 = vpop.f32.mrb[27].mxu1  ;;  %v1119_v21 = vadd.f32 %v1115_v20, %v6379_v6  ;;  %v1044_v56 = vadd.f32 %v1040_v9, %v6388_v43  ;;  %v6397_v9 = vadd.f32 %v6353_v11, %v713_v45 }
 0x10d   :  { %5742 = vpow2.f32 %v5133_v5 }
 0x10e   :  { %v5136_v39 = vmul.f32 -1.442695, %v1119_v21 }
 0x10f   :  { %v1200_v25 = vpop.f32.mrb[28].mxu0  ;;  %v1283_v23 = vpop.f32.mrb[28].mxu1 }
 0x110   :  { %v1205_v32 = vrot.slane %v1200_v25, 4  ;;  %v1288_v33 = vrot.slane %v1283_v23, 4  ;;  %v5503_v36 = vpop.f32.mrb[29].mxu0  ;;  %v5508_v41 = vpop.f32.mrb[29].mxu1  ;;  %5744 = vpow2.f32 %v5136_v39 }
 0x112   :  { %v1207_v44 = vadd.f32 %v1205_v32, %v6382_v26  ;;  %v1290_v49 = vadd.f32 %v1288_v33, %v6384_v31 }
 0x113   :  { %v1366_v50 = vpop.f32.mrb[30].mxu0  ;;  %v1444_v55 = vpop.f32.mrb[30].mxu1 }
 0x114   :  { %v5138_v7 = vmul.f32 -1.442695, %v1207_v44  ;;  %v5140_v57 = vmul.f32 -1.442695, %v1290_v49  ;;  %v1449_v8 = vrot.slane %v1444_v55, 4  ;;  %v5513_v58 = vpop.f32.mrb[31].mxu0 }
 0x115   :  { %v5518_v59 = vpop.f32.mrb[31].mxu1  ;;  %v1371_v5 = vrot.slane %v1366_v50, 4 }
 0x116   :  { %v5741_v62 = vpop.eup %5740  ;;  %5746 = vpow2.f32 %v5138_v7  ;;  %v1451_v2 = vadd.f32 %v1449_v8, %v6393_v0 }
 0x117   :  { %v5743_v63 = vpop.eup %5742  ;;  %v888_v38 = vadd.f32 1.0, %v5741_v62  ;;  %5748 = vpow2.f32 %v5140_v57  ;;  %v1373_v24 = vadd.f32 %v1371_v5, %v6397_v9 }
 0x118   :  { %v968_v42 = vadd.f32 1.0, %v5743_v63  ;;  %5750 = vtanh.f32 %v1044_v56  ;;  %v5143_v20 = vmul.f32 -1.442695, %v1451_v2 }
 0x119   :  { %5752 = vrcp.f32 %v888_v38 }
 0x11a   :  { %5754 = vrcp.f32 %v968_v42  ;;  %v5745_v10 = vpop.eup %5744 }
 0x11b   :  { %5756 = vpow2.f32 %v5143_v20  ;;  %v1123_v41 = vadd.f32 1.0, %v5745_v10 }
 0x11c   :  { %5758 = vtanh.f32 %v1373_v24 }
 0x120   :  { %v5747_v21 = vpop.eup %5746 }
 0x121   :  { %v5749_v25 = vpop.eup %5748  ;;  %v1211_v22 = vadd.f32 1.0, %v5747_v21 }
 0x122   :  { %v5751_v48 = vpop.eup %5750  ;;  %v1294_v23 = vadd.f32 1.0, %v5749_v25 }
 0x123   :  { %v5753_v32 = vpop.eup %5752  ;;  %5760 = vrcp.f32 %v1211_v22 }
 0x124   :  { %v5755_v33 = vpop.eup %5754  ;;  %v1127_v36 = vmul.f32 %v5753_v32, %v5751_v48  ;;  %5762 = vrcp.f32 %v1294_v23 }
 0x125   :  { %v1126_v39 = vmul.f32 0.0, %v5755_v33  ;;  %5764 = vrcp.f32 %v1123_v41  ;;  %v5757_v45 = vpop.eup %5756 }
 0x126   :  { %v5759_v44 = vpop.eup %5758  ;;  %v1455_v56 = vadd.f32 1.0, %v5757_v45 }
 0x127   :  { %v6400_v11 = vadd.f32 %v1127_v36, %v1126_v39 }
 0x129   :  { %5766 = vtanh.f32 %v6400_v11 }
 0x12a   :  { %5768 = vrcp.f32 %v1455_v56 }
 0x12d   :  { %v5761_v49 = vpop.eup %5760 }
 0x12e   :  { %v5763_v50 = vpop.eup %5762  ;;  %v1459_v55 = vmul.f32 %v5761_v49, %v5759_v44 }
 0x12f   :  { %v1458_v7 = vmul.f32 0.0, %v5763_v50  ;;  %v5765_v8 = vpop.eup %5764 }
 0x131   :  { %v6403_v57 = vadd.f32 %v1459_v55, %v1458_v7 }
 0x133   :  { %v5767_v58 = vpop.eup %5766  ;;  %5770 = vtanh.f32 %v6403_v57 }
 0x134   :  { %v6406_v59 = vmul.f32 %v5767_v58, %v5765_v8  ;;  %v5769_v62 = vpop.eup %5768 }
 0x136   :  { %5522 = vmatmul.mubr.msk.f32.vlgmr.msra.gmra.mrb[32].mxu0 %vm806_vm4, %v6406_v59  ;;  %5527 = vmatmul.mubr.msk.f32.vlgmr.msra.gmra.mrb[32].mxu1 %vm806_vm4, %v6406_v59 }
 0x137   :  { %5530 = vmatpush3.msk.msra.mxu0 %vm810_vm3, %v6213_v14  ;;  %5531 = vmatprep.mubr.msk.f32.mxu0 %vm5979_vm2, %v5978_v1 }
 0x138   :  { %5535 = vmatpush3.msk.msra.mxu1 %vm810_vm3, %v6218_v15  ;;  %5536 = vmatprep.mubr.msk.f32.mxu1 %vm5979_vm2, %v5978_v1 }
 0x139   :  { %5539 = vmatprep.subr.mxu0 %v5978_v1  ;;  %5544 = vmatprep.subr.mxu1 %v5978_v1 }
 0x13a   :  { %5532 = vmatmul.mubr.msk.f32.vlgmr.msra.gmra.mrb[34].mxu0 %vm806_vm4, %v6406_v59  ;;  %5537 = vmatmul.mubr.msk.f32.vlgmr.msra.gmra.mrb[34].mxu1 %vm806_vm4, %v6406_v59 }
 0x13b   :  { %5540 = vmatpush3.msk.msra.mxu0 %vm810_vm3, %v6233_v16  ;;  %5545 = vmatpush3.msk.msra.mxu1 %vm810_vm3, %v6238_v17 }
 0x13c   :  { %5541 = vmatprep.mubr.msk.f32.mxu0 %vm5979_vm2, %v5978_v1  ;;  %5546 = vmatprep.mubr.msk.f32.mxu1 %vm5979_vm2, %v5978_v1 }
 0x13d   :  { %v5771_v63 = vpop.eup %5770  ;;  %5549 = vmatprep.subr.mxu0 %v5978_v1  ;;  %5554 = vmatprep.subr.mxu1 %v5978_v1 }
 0x13e   :  { %v6436_v38 = vmul.f32 %v5771_v63, %v5769_v62 }
 0x140   :  { %v1790_v42 = vrot.slane %v6436_v38, 4 }
 0x142   :  { %5542 = vmatmul.mubr.msk.f32.vlgmr.msra.gmra.mrb[36].mxu0 %vm806_vm4, %v1790_v42  ;;  %5547 = vmatmul.mubr.msk.f32.vlgmr.msra.gmra.mrb[36].mxu1 %vm806_vm4, %v1790_v42 }
 0x143   :  { %5550 = vmatpush3.msk.msra.mxu0 %vm810_vm3, %v6255_v18  ;;  %5551 = vmatprep.mubr.msk.f32.mxu0 %vm5979_vm2, %v5978_v1 }
 0x144   :  { %5555 = vmatpush3.msk.msra.mxu1 %vm810_vm3, %v6262_v19  ;;  %5556 = vmatprep.mubr.msk.f32.mxu1 %vm5979_vm2, %v5978_v1 }
 0x145   :  { %5559 = vmatprep.subr.mxu0 %v5978_v1  ;;  %5564 = vmatprep.subr.mxu1 %v5978_v1 }
 0x146   :  { %5552 = vmatmul.mubr.msk.f32.vlgmr.msra.gmra.mrb[38].mxu0 %vm806_vm4, %v1790_v42  ;;  %5557 = vmatmul.mubr.msk.f32.vlgmr.msra.gmra.mrb[38].mxu1 %vm806_vm4, %v1790_v42 }
 0x147   :  { %5560 = vmatpush3.msk.msra.mxu0 %vm810_vm3, %v6175_v12  ;;  %5565 = vmatpush3.msk.msra.mxu1 %vm810_vm3, %v6180_v13 }
 0x148   :  { %5561 = vmatprep.mubr.msk.f32.mxu0 %vm5979_vm2, %v5978_v1  ;;  %5566 = vmatprep.mubr.msk.f32.mxu1 %vm5979_vm2, %v5978_v1 }
 0x149   :  { %5569 = vmatprep.subr.mxu0 %v5978_v1  ;;  %5574 = vmatprep.subr.mxu1 %v5978_v1 }
 0x209   :  { %v1532_v2 = vpop.f32.mrb[32].mxu0  ;;  %v1612_v5 = vpop.f32.mrb[32].mxu1 }
 0x20a   :  { %v1537_v20 = vrot.slane %v1532_v2, 4  ;;  %v1617_v24 = vrot.slane %v1612_v5, 4  ;;  %v5523_v10 = vpop.f32.mrb[33].mxu0  ;;  %v5528_v21 = vpop.f32.mrb[33].mxu1 }
 0x20c   :  { %v1539_v25 = vadd.f32 %v1537_v20, %v6370_v51  ;;  %v1619_v22 = vadd.f32 %v1617_v24, %v6374_v54 }
 0x20d   :  { %v1692_v48 = vpop.f32.mrb[34].mxu0  ;;  %v1767_v23 = vpop.f32.mrb[34].mxu1 }
 0x20e   :  { %v5146_v32 = vmul.f32 -1.442695, %v1539_v25  ;;  %v5149_v33 = vmul.f32 -1.442695, %v1619_v22  ;;  %v1772_v36 = vrot.slane %v1767_v23, 4  ;;  %v5533_v41 = vpop.f32.mrb[35].mxu0 }
 0x20f   :  { %v5538_v39 = vpop.f32.mrb[35].mxu1  ;;  %v1697_v44 = vrot.slane %v1692_v48, 4 }
 0x210   :  { %5772 = vpow2.f32 %v5146_v32  ;;  %v1774_v45 = vadd.f32 %v1772_v36, %v6379_v6  ;;  %v1782_v36 = vrot.slane %v6400_v11, 4 }
 0x211   :  { %5774 = vpow2.f32 %v5149_v33  ;;  %v1699_v8 = vadd.f32 %v1697_v44, %v6388_v43 }
 0x212   :  { %v5154_v49 = vmul.f32 -1.442695, %v1774_v45 }
 0x214   :  { %5776 = vpow2.f32 %v5154_v49 }
 0x215   :  { %v1859_v50 = vpop.f32.mrb[36].mxu0  ;;  %v1936_v55 = vpop.f32.mrb[36].mxu1 }
 0x216   :  { %v1863_v56 = vadd.f32 %v1859_v50, %v6382_v26  ;;  %v1940_v51 = vadd.f32 %v1936_v55, %v6384_v31  ;;  %v5543_v54 = vpop.f32.mrb[37].mxu0  ;;  %v5548_v7 = vpop.f32.mrb[37].mxu1  ;;  %v2097_v55 = vrot.slane %v6403_v57, 4 }
 0x218   :  { %v5157_v58 = vmul.f32 -1.442695, %v1863_v56  ;;  %v5160_v62 = vmul.f32 -1.442695, %v1940_v51 }
 0x219   :  { %v2013_v63 = vpop.f32.mrb[38].mxu0  ;;  %v2085_v42 = vpop.f32.mrb[38].mxu1 }
 0x21a   :  { %v5773_v2 = vpop.eup %5772  ;;  %5778 = vpow2.f32 %v5157_v58  ;;  %v5553_v6 = vpop.f32.mrb[39].mxu0  ;;  %v2089_v26 = vadd.f32 %v2085_v42, %v6393_v0  ;;  %v2017_v43 = vadd.f32 %v2013_v63, %v6397_v9 }
 0x21b   :  { %v5558_v5 = vpop.f32.mrb[39].mxu1  ;;  %v5775_v20 = vpop.eup %5774  ;;  %v1543_v24 = vadd.f32 1.0, %v5773_v2  ;;  %5780 = vpow2.f32 %v5160_v62 }
 0x21c   :  { %v1623_v10 = vadd.f32 1.0, %v5775_v20  ;;  %5782 = vtanh.f32 %v1699_v8  ;;  %v5165_v31 = vmul.f32 -1.442695, %v2089_v26 }
 0x21d   :  { %5784 = vrcp.f32 %v1543_v24 }
 0x21e   :  { %5786 = vrcp.f32 %v1623_v10  ;;  %v5777_v21 = vpop.eup %5776 }
 0x21f   :  { %5788 = vpow2.f32 %v5165_v31  ;;  %v1778_v45 = vadd.f32 1.0, %v5777_v21 }
 0x220   :  { %5790 = vtanh.f32 %v2017_v43 }
 0x224   :  { %v5779_v25 = vpop.eup %5778 }
 0x225   :  { %v5781_v22 = vpop.eup %5780  ;;  %v1867_v48 = vadd.f32 1.0, %v5779_v25 }
 0x226   :  { %v5783_v23 = vpop.eup %5782  ;;  %v1944_v32 = vadd.f32 1.0, %v5781_v22 }
 0x227   :  { %v5785_v33 = vpop.eup %5784  ;;  %5792 = vrcp.f32 %v1867_v48 }
 0x228   :  { %v5787_v41 = vpop.eup %5786  ;;  %v1785_v39 = vmul.f32 %v5785_v33, %v5783_v23  ;;  %5794 = vrcp.f32 %v1944_v32 }
 0x229   :  { %v1784_v0 = vmul.f32 %v5787_v41, %v1782_v36  ;;  %5796 = vrcp.f32 %v1778_v45  ;;  %v5789_v9 = vpop.eup %5788 }
 0x22a   :  { %v5791_v49 = vpop.eup %5790  ;;  %v2093_v54 = vadd.f32 1.0, %v5789_v9 }
 0x22b   :  { %v6472_v44 = vadd.f32 %v1785_v39, %v1784_v0 }
 0x22d   :  { %5798 = vtanh.f32 %v6472_v44 }
 0x22e   :  { %5800 = vrcp.f32 %v2093_v54 }
 0x231   :  { %v5793_v50 = vpop.eup %5792 }
 0x232   :  { %v5795_v56 = vpop.eup %5794  ;;  %v2100_v51 = vmul.f32 %v5793_v50, %v5791_v49 }
 0x233   :  { %v2099_v11 = vmul.f32 %v5795_v56, %v2097_v55  ;;  %v5797_v8 = vpop.eup %5796 }
 0x235   :  { %v6476_v7 = vadd.f32 %v2100_v51, %v2099_v11 }
 0x237   :  { %v5799_v58 = vpop.eup %5798  ;;  %5802 = vtanh.f32 %v6476_v7 }
 0x238   :  { %v6479_v62 = vmul.f32 %v5799_v58, %v5797_v8  ;;  %v5801_v57 = vpop.eup %5800 }
 0x23a   :  { %v2105_v63 = vrot.slane %v6479_v62, 4 }
 0x23c   :  { %5562 = vmatmul.mubr.msk.f32.vlgmr.msra.gmra.mrb[40].mxu0 %vm806_vm4, %v2105_v63  ;;  %5567 = vmatmul.mubr.msk.f32.vlgmr.msra.gmra.mrb[40].mxu1 %vm806_vm4, %v2105_v63 }
 0x23d   :  { %5570 = vmatpush3.msk.msra.mxu0 %vm810_vm3, %v6213_v14  ;;  %5575 = vmatpush3.msk.msra.mxu1 %vm810_vm3, %v6218_v15 }
 0x23e   :  { %5571 = vmatprep.mubr.msk.f32.mxu0 %vm5979_vm2, %v5978_v1  ;;  %5576 = vmatprep.mubr.msk.f32.mxu1 %vm5979_vm2, %v5978_v1 }
 0x23f   :  { %5579 = vmatprep.subr.mxu0 %v5978_v1  ;;  %5584 = vmatprep.subr.mxu1 %v5978_v1 }
 0x240   :  { %5572 = vmatmul.mubr.msk.f32.vlgmr.msra.gmra.mrb[42].mxu0 %vm806_vm4, %v2105_v63  ;;  %5577 = vmatmul.mubr.msk.f32.vlgmr.msra.gmra.mrb[42].mxu1 %vm806_vm4, %v2105_v63 }
 0x241   :  { %v5803_v42 = vpop.eup %5802  ;;  %5580 = vmatpush3.msk.msra.mxu0 %vm810_vm3, %v6233_v16  ;;  %5585 = vmatpush3.msk.msra.mxu1 %vm810_vm3, %v6238_v17 }
 0x242   :  { %v6500_v2 = vmul.f32 %v5803_v42, %v5801_v57  ;;  %5581 = vmatprep.mubr.msk.f32.mxu0 %vm5979_vm2, %v5978_v1  ;;  %5586 = vmatprep.mubr.msk.f32.mxu1 %vm5979_vm2, %v5978_v1 }
 0x243   :  { %5589 = vmatprep.subr.mxu0 %v5978_v1  ;;  %5594 = vmatprep.subr.mxu1 %v5978_v1 }
 0x244   :  { %5582 = vmatmul.mubr.msk.f32.vlgmr.msra.gmra.mrb[44].mxu0 %vm806_vm4, %v6500_v2  ;;  %5587 = vmatmul.mubr.msk.f32.vlgmr.msra.gmra.mrb[44].mxu1 %vm806_vm4, %v6500_v2 }
 0x245   :  { %5590 = vmatpush3.msk.msra.mxu0 %vm810_vm3, %v6255_v18  ;;  %5591 = vmatprep.mubr.msk.f32.mxu0 %vm5979_vm2, %v5978_v1 }
 0x246   :  { %5595 = vmatpush3.msk.msra.mxu1 %vm810_vm3, %v6262_v19  ;;  %5596 = vmatprep.mubr.msk.f32.mxu1 %vm5979_vm2, %v5978_v1 }
 0x247   :  { %5599 = vmatprep.subr.mxu0 %v5978_v1  ;;  %5604 = vmatprep.subr.mxu1 %v5978_v1 }
 0x248   :  { %5592 = vmatmul.mubr.msk.f32.vlgmr.msra.gmra.mrb[46].mxu0 %vm806_vm4, %v6500_v2  ;;  %5597 = vmatmul.mubr.msk.f32.vlgmr.msra.gmra.mrb[46].mxu1 %vm806_vm4, %v6500_v2 }
 0x249   :  { %5600 = vmatpush3.msk.msra.mxu0 %vm810_vm3, %v6175_v12  ;;  %5605 = vmatpush3.msk.msra.mxu1 %vm810_vm3, %v6180_v13 }
 0x24a   :  { %5601 = vmatprep.mubr.msk.f32.mxu0 %vm5979_vm2, %v5978_v1  ;;  %5606 = vmatprep.mubr.msk.f32.mxu1 %vm5979_vm2, %v5978_v1 }
 0x24b   :  { %5609 = vmatprep.subr.mxu0 %v5978_v1  ;;  %5614 = vmatprep.subr.mxu1 %v5978_v1 }
 0x30f   :  { %v2174_v6 = vpop.f32.mrb[40].mxu0  ;;  %v2251_v5 = vpop.f32.mrb[40].mxu1 }
 0x310   :  { %v2178_v20 = vadd.f32 %v2174_v6, %v6303_v28  ;;  %v2255_v24 = vadd.f32 %v2251_v5, %v6306_v29  ;;  %v5563_v10 = vpop.f32.mrb[41].mxu0  ;;  %v5568_v26 = vpop.f32.mrb[41].mxu1 }
 0x312   :  { %v5168_v31 = vmul.f32 -1.442695, %v2178_v20  ;;  %v5171_v43 = vmul.f32 -1.442695, %v2255_v24 }
 0x313   :  { %v2328_v21 = vpop.f32.mrb[42].mxu0  ;;  %v2400_v25 = vpop.f32.mrb[42].mxu1 }
 0x314   :  { %5804 = vpow2.f32 %v5168_v31  ;;  %v5573_v22 = vpop.f32.mrb[43].mxu0  ;;  %v5578_v48 = vpop.f32.mrb[43].mxu1  ;;  %v2404_v23 = vadd.f32 %v2400_v25, %v6329_v47  ;;  %v2332_v56 = vadd.f32 %v2328_v21, %v6327_v46 }
 0x315   :  { %5806 = vpow2.f32 %v5171_v43 }
 0x316   :  { %v5176_v0 = vmul.f32 -1.442695, %v2404_v23  ;;  %v2412_v23 = vrot.slane %v6472_v44, 4 }
 0x317   :  { %v2488_v32 = vpop.f32.mrb[44].mxu0  ;;  %v2568_v33 = vpop.f32.mrb[44].mxu1 }
 0x318   :  { %v2493_v36 = vrot.slane %v2488_v32, 4  ;;  %v2573_v41 = vrot.slane %v2568_v33, 4  ;;  %v5583_v39 = vpop.f32.mrb[45].mxu0  ;;  %v5588_v45 = vpop.f32.mrb[45].mxu1  ;;  %5808 = vpow2.f32 %v5176_v0 }
 0x31a   :  { %v2495_v9 = vadd.f32 %v2493_v36, %v6346_v3  ;;  %v2575_v49 = vadd.f32 %v2573_v41, %v6348_v4 }
 0x31b   :  { %v2648_v50 = vpop.f32.mrb[46].mxu0  ;;  %v2723_v55 = vpop.f32.mrb[46].mxu1 }
 0x31c   :  { %v5179_v51 = vmul.f32 -1.442695, %v2495_v9  ;;  %v5182_v54 = vmul.f32 -1.442695, %v2575_v49  ;;  %v2728_v11 = vrot.slane %v2723_v55, 4  ;;  %v5593_v8 = vpop.f32.mrb[47].mxu0 }
 0x31d   :  { %v5598_v58 = vpop.f32.mrb[47].mxu1  ;;  %v2653_v20 = vrot.slane %v2648_v50, 4  ;;  %v2738_v49 = vrot.slane %v6476_v7, 4 }
 0x31e   :  { %v5805_v63 = vpop.eup %5804  ;;  %5810 = vpow2.f32 %v5179_v51  ;;  %v2730_v5 = vadd.f32 %v2728_v11, %v6366_v40 }
 0x31f   :  { %v5807_v57 = vpop.eup %5806  ;;  %v2182_v42 = vadd.f32 1.0, %v5805_v63  ;;  %5812 = vpow2.f32 %v5182_v54  ;;  %v2655_v10 = vadd.f32 %v2653_v20, %v6364_v37 }
 0x320   :  { %v2259_v6 = vadd.f32 1.0, %v5807_v57  ;;  %5814 = vtanh.f32 %v2332_v56  ;;  %v5187_v24 = vmul.f32 -1.442695, %v2730_v5 }
 0x321   :  { %5816 = vrcp.f32 %v2182_v42 }
 0x322   :  { %5818 = vrcp.f32 %v2259_v6  ;;  %v5809_v26 = vpop.eup %5808 }
 0x323   :  { %5820 = vpow2.f32 %v5187_v24  ;;  %v2408_v36 = vadd.f32 1.0, %v5809_v26 }
 0x324   :  { %5822 = vtanh.f32 %v2655_v10 }
 0x328   :  { %v5811_v31 = vpop.eup %5810 }
 0x329   :  { %v5813_v43 = vpop.eup %5812  ;;  %v2499_v21 = vadd.f32 1.0, %v5811_v31 }
 0x32a   :  { %v5815_v25 = vpop.eup %5814  ;;  %v2579_v22 = vadd.f32 1.0, %v5813_v43 }
 0x32b   :  { %v5817_v48 = vpop.eup %5816  ;;  %5824 = vrcp.f32 %v2499_v21 }
 0x32c   :  { %v5819_v32 = vpop.eup %5818  ;;  %v2415_v33 = vmul.f32 %v5817_v48, %v5815_v25  ;;  %5826 = vrcp.f32 %v2579_v22 }
 0x32d   :  { %v2414_v41 = vmul.f32 %v5819_v32, %v2412_v23  ;;  %5828 = vrcp.f32 %v2408_v36  ;;  %v5821_v45 = vpop.eup %5820 }
 0x32e   :  { %v5823_v0 = vpop.eup %5822  ;;  %v2734_v56 = vadd.f32 1.0, %v5821_v45 }
 0x32f   :  { %v6545_v39 = vadd.f32 %v2415_v33, %v2414_v41 }
 0x331   :  { %5830 = vtanh.f32 %v6545_v39 }
 0x332   :  { %5832 = vrcp.f32 %v2734_v56 }
 0x335   :  { %v5825_v9 = vpop.eup %5824 }
 0x336   :  { %v5827_v50 = vpop.eup %5826  ;;  %v2741_v55 = vmul.f32 %v5825_v9, %v5823_v0 }
 0x337   :  { %v2740_v44 = vmul.f32 %v5827_v50, %v2738_v49  ;;  %v5829_v54 = vpop.eup %5828 }
 0x339   :  { %v6549_v51 = vadd.f32 %v2741_v55, %v2740_v44 }
 0x33b   :  { %v5831_v11 = vpop.eup %5830  ;;  %5834 = vtanh.f32 %v6549_v51 }
 0x33c   :  { %v6552_v8 = vmul.f32 %v5831_v11, %v5829_v54 }
 0x33e   :  { %5602 = vmatmul.mubr.msk.f32.vlgmr.msra.gmra.mrb[48].mxu0 %vm806_vm4, %v6552_v8  ;;  %5607 = vmatmul.mubr.msk.f32.vlgmr.msra.gmra.mrb[48].mxu1 %vm806_vm4, %v6552_v8 }
 0x33f   :  { %5610 = vmatpush3.msk.msra.mxu0 %vm810_vm3, %v6213_v14  ;;  %5611 = vmatprep.mubr.msk.f32.mxu0 %vm5979_vm2, %v5978_v1  ;;  %v5833_v14 = vpop.eup %5832 }
 0x340   :  { %5615 = vmatpush3.msk.msra.mxu1 %vm810_vm3, %v6218_v15  ;;  %5616 = vmatprep.mubr.msk.f32.mxu1 %vm5979_vm2, %v5978_v1 }
 0x341   :  { %5619 = vmatprep.subr.mxu0 %v5978_v1  ;;  %5624 = vmatprep.subr.mxu1 %v5978_v1 }
 0x342   :  { %5612 = vmatmul.mubr.msk.f32.vlgmr.msra.gmra.mrb[50].mxu0 %vm806_vm4, %v6552_v8  ;;  %5617 = vmatmul.mubr.msk.f32.vlgmr.msra.gmra.mrb[50].mxu1 %vm806_vm4, %v6552_v8 }
 0x343   :  { %5620 = vmatpush3.msk.msra.mxu0 %vm810_vm3, %v6233_v16  ;;  %5625 = vmatpush3.msk.msra.mxu1 %vm810_vm3, %v6238_v17 }
 0x344   :  { %5621 = vmatprep.mubr.msk.f32.mxu0 %vm5979_vm2, %v5978_v1  ;;  %5626 = vmatprep.mubr.msk.f32.mxu1 %vm5979_vm2, %v5978_v1 }
 0x345   :  { %v5835_v15 = vpop.eup %5834  ;;  %5629 = vmatprep.subr.mxu0 %v5978_v1  ;;  %5634 = vmatprep.subr.mxu1 %v5978_v1 }
 0x346   :  { %v6582_v7 = vmul.f32 %v5835_v15, %v5833_v14 }
 0x348   :  { %v3072_v58 = vrot.slane %v6582_v7, 4 }
 0x34a   :  { %5622 = vmatmul.mubr.msk.f32.vlgmr.msra.gmra.mrb[52].mxu0 %vm806_vm4, %v3072_v58  ;;  %5627 = vmatmul.mubr.msk.f32.vlgmr.msra.gmra.mrb[52].mxu1 %vm806_vm4, %v3072_v58 }
 0x34b   :  { %5630 = vmatpush3.msk.msra.mxu0 %vm810_vm3, %v6255_v18  ;;  %5631 = vmatprep.mubr.msk.f32.mxu0 %vm5979_vm2, %v5978_v1 }
 0x34c   :  { %5635 = vmatpush3.msk.msra.mxu1 %vm810_vm3, %v6262_v19  ;;  %5636 = vmatprep.mubr.msk.f32.mxu1 %vm5979_vm2, %v5978_v1 }
 0x34d   :  { %5639 = vmatprep.subr.mxu0 %v5978_v1  ;;  %5644 = vmatprep.subr.mxu1 %v5978_v1 }
 0x34e   :  { %5632 = vmatmul.mubr.msk.f32.vlgmr.msra.gmra.mrb[54].mxu0 %vm806_vm4, %v3072_v58  ;;  %5637 = vmatmul.mubr.msk.f32.vlgmr.msra.gmra.mrb[54].mxu1 %vm806_vm4, %v3072_v58 }
 0x34f   :  { %5640 = vmatpush3.msk.msra.mxu0 %vm810_vm3, %v6175_v12  ;;  %5645 = vmatpush3.msk.msra.mxu1 %vm810_vm3, %v6180_v13 }
 0x350   :  { %5641 = vmatprep.mubr.msk.f32.mxu0 %vm5979_vm2, %v5978_v1  ;;  %5646 = vmatprep.mubr.msk.f32.mxu1 %vm5979_vm2, %v5978_v1 }
 0x351   :  { %5649 = vmatprep.subr.mxu0 %v5978_v1  ;;  %5654 = vmatprep.subr.mxu1 %v5978_v1 }
 0x411   :  { %v2814_v16 = vpop.f32.mrb[48].mxu0  ;;  %v2894_v17 = vpop.f32.mrb[48].mxu1 }
 0x412   :  { %v2819_v18 = vrot.slane %v2814_v16, 4  ;;  %v2899_v19 = vrot.slane %v2894_v17, 4  ;;  %v5603_v63 = vpop.f32.mrb[49].mxu0  ;;  %v5608_v57 = vpop.f32.mrb[49].mxu1  ;;  %v3064_v16 = vrot.slane %v6545_v39, 4 }
 0x414   :  { %v2821_v12 = vadd.f32 %v2819_v18, %v6303_v28  ;;  %v2901_v13 = vadd.f32 %v2899_v19, %v6306_v29 }
 0x415   :  { %v2974_v42 = vpop.f32.mrb[50].mxu0  ;;  %v3049_v6 = vpop.f32.mrb[50].mxu1 }
 0x416   :  { %v5190_v5 = vmul.f32 -1.442695, %v2821_v12  ;;  %v5193_v20 = vmul.f32 -1.442695, %v2901_v13  ;;  %v3054_v24 = vrot.slane %v3049_v6, 4  ;;  %v5613_v10 = vpop.f32.mrb[51].mxu0 }
 0x417   :  { %v5618_v26 = vpop.f32.mrb[51].mxu1  ;;  %v2979_v43 = vrot.slane %v2974_v42, 4  ;;  %v3379_v13 = vrot.slane %v6549_v51, 4  ;;  %v6633_v51 = vld [vmem:[%s6871_s2 + $0x10] sm:$0x1f] }
 0x418   :  { %5836 = vpow2.f32 %v5190_v5  ;;  %v3056_v31 = vadd.f32 %v3054_v24, %v6329_v47 }
 0x419   :  { %5838 = vpow2.f32 %v5193_v20  ;;  %v2981_v32 = vadd.f32 %v2979_v43, %v6327_v46  ;;  %v6640_v43 = vld [vmem:[%s6871_s2 + $0x18] sm:$0x1f] }
 0x41a   :  { %v5198_v21 = vmul.f32 -1.442695, %v3056_v31 }
 0x41c   :  { %5840 = vpow2.f32 %v5198_v21 }
 0x41d   :  { %v3141_v25 = vpop.f32.mrb[52].mxu0  ;;  %v3218_v22 = vpop.f32.mrb[52].mxu1 }
 0x41e   :  { %v3145_v48 = vadd.f32 %v3141_v25, %v6346_v3  ;;  %v3222_v28 = vadd.f32 %v3218_v22, %v6348_v4  ;;  %v5623_v29 = vpop.f32.mrb[53].mxu0  ;;  %v5628_v23 = vpop.f32.mrb[53].mxu1  ;;  %v6655_v22 = vld [vmem:[%s6874_s5] sm:$0x1f] }
 0x41f   :  { %v6681_v29 = vld [vmem:[%s6874_s5 + $0x10] sm:$0x1f]  ;;  %v6690_v23 = vld [vmem:[%s6874_s5 + $0x18] sm:$0x1f] }
 0x420   :  { %v5201_v33 = vmul.f32 -1.442695, %v3145_v48  ;;  %v5204_v36 = vmul.f32 -1.442695, %v3222_v28  ;;  %v6662_v48 = vld [vmem:[%s6874_s5 + $0x8] sm:$0x1f] }
 0x421   :  { %v3295_v41 = vpop.f32.mrb[54].mxu0  ;;  %v3367_v45 = vpop.f32.mrb[54].mxu1 }
 0x422   :  { %v5837_v0 = vpop.eup %5836  ;;  %5842 = vpow2.f32 %v5201_v33  ;;  %v5633_v47 = vpop.f32.mrb[55].mxu0  ;;  %v3371_v3 = vadd.f32 %v3367_v45, %v6366_v40  ;;  %v3299_v46 = vadd.f32 %v3295_v41, %v6364_v37  ;;  %v5953_v33 = vld [vmem:[%s6871_s2 + $0x8] sm:$0x1f] }
 0x423   :  { %v5638_v9 = vpop.f32.mrb[55].mxu1  ;;  %v5839_v49 = vpop.eup %5838  ;;  %v2825_v50 = vadd.f32 1.0, %v5837_v0  ;;  %5844 = vpow2.f32 %v5204_v36 }
 0x424   :  { %v2905_v55 = vadd.f32 1.0, %v5839_v49  ;;  %5846 = vtanh.f32 %v2981_v32  ;;  %v5209_v4 = vmul.f32 -1.442695, %v3371_v3  ;;  %v5952_v32 = vld [vmem:[%s6871_s2] sm:$0x1f]  ;;  %s5981_s2 = smov 4  }
 0x425   :  { %5848 = vrcp.f32 %v2825_v50 }
 0x426   :  { %5850 = vrcp.f32 %v2905_v55  ;;  %v5841_v56 = vpop.eup %5840 }
 0x427   :  { %5852 = vpow2.f32 %v5209_v4  ;;  %v3060_v19 = vadd.f32 1.0, %v5841_v56 }
 0x428   :  { %5854 = vtanh.f32 %v3299_v46 }
 0x42c   :  { %v5843_v44 = vpop.eup %5842 }
 0x42d   :  { %v5845_v54 = vpop.eup %5844  ;;  %v3149_v11 = vadd.f32 1.0, %v5843_v44 }
 0x42e   :  { %v5847_v14 = vpop.eup %5846  ;;  %v3226_v15 = vadd.f32 1.0, %v5845_v54 }
 0x42f   :  { %v5849_v58 = vpop.eup %5848  ;;  %5856 = vrcp.f32 %v3149_v11 }
 0x430   :  { %v5851_v17 = vpop.eup %5850  ;;  %v3067_v18 = vmul.f32 %v5849_v58, %v5847_v14  ;;  %5858 = vrcp.f32 %v3226_v15 }
 0x431   :  { %v3066_v40 = vmul.f32 %v5851_v17, %v3064_v16  ;;  %5860 = vrcp.f32 %v3060_v19  ;;  %v5853_v37 = vpop.eup %5852 }
 0x432   :  { %v5855_v57 = vpop.eup %5854  ;;  %v3375_v5 = vadd.f32 1.0, %v5853_v37 }
 0x433   :  { %v6618_v63 = vadd.f32 %v3067_v18, %v3066_v40 }
 0x435   :  { %5862 = vtanh.f32 %v6618_v63 }
 0x436   :  { %5864 = vrcp.f32 %v3375_v5 }
 0x439   :  { %v5857_v12 = vpop.eup %5856 }
 0x43a   :  { %v5859_v42 = vpop.eup %5858  ;;  %v3382_v6 = vmul.f32 %v5857_v12, %v5855_v57 }
 0x43b   :  { %v3381_v39 = vmul.f32 %v5859_v42, %v3379_v13  ;;  %v5861_v24 = vpop.eup %5860 }
 0x43d   :  { %v6622_v20 = vadd.f32 %v3382_v6, %v3381_v39 }
 0x43f   :  { %v5863_v10 = vpop.eup %5862  ;;  %5866 = vtanh.f32 %v6622_v20 }
 0x440   :  { %v6625_v26 = vmul.f32 %v5863_v10, %v5861_v24  ;;  %v5865_v21 = vpop.eup %5864 }
 0x442   :  { %v3387_v31 = vrot.slane %v6625_v26, 4 }
 0x444   :  { %5642 = vmatmul.mubr.msk.f32.vlgmr.msra.gmra.mrb[56].mxu0 %vm806_vm4, %v3387_v31  ;;  %5647 = vmatmul.mubr.msk.f32.vlgmr.msra.gmra.mrb[56].mxu1 %vm806_vm4, %v3387_v31 }
 0x445   :  { %5650 = vmatpush3.msk.msra.mxu0 %vm810_vm3, %v6633_v51  ;;  %5655 = vmatpush3.msk.msra.mxu1 %vm810_vm3, %v6640_v43 }
 0x446   :  { %5651 = vmatprep.mubr.msk.f32.mxu0 %vm5979_vm2, %v5978_v1  ;;  %5656 = vmatprep.mubr.msk.f32.mxu1 %vm5979_vm2, %v5978_v1 }
 0x447   :  { %5659 = vmatprep.subr.mxu0 %v5978_v1  ;;  %5664 = vmatprep.subr.mxu1 %v5978_v1 }
 0x448   :  { %5652 = vmatmul.mubr.msk.f32.vlgmr.msra.gmra.mrb[58].mxu0 %vm806_vm4, %v3387_v31  ;;  %5657 = vmatmul.mubr.msk.f32.vlgmr.msra.gmra.mrb[58].mxu1 %vm806_vm4, %v3387_v31 }
 0x449   :  { %v5867_v25 = vpop.eup %5866  ;;  %5660 = vmatpush3.msk.msra.mxu0 %vm810_vm3, %v6655_v22  ;;  %5665 = vmatpush3.msk.msra.mxu1 %vm810_vm3, %v6662_v48 }
 0x44a   :  { %v6666_v28 = vmul.f32 %v5867_v25, %v5865_v21  ;;  %5661 = vmatprep.mubr.msk.f32.mxu0 %vm5979_vm2, %v5978_v1  ;;  %5666 = vmatprep.mubr.msk.f32.mxu1 %vm5979_vm2, %v5978_v1 }
 0x44b   :  { %5669 = vmatprep.subr.mxu0 %v5978_v1  ;;  %5674 = vmatprep.subr.mxu1 %v5978_v1 }
 0x44c   :  { %5662 = vmatmul.mubr.msk.f32.vlgmr.msra.gmra.mrb[60].mxu0 %vm806_vm4, %v6666_v28  ;;  %5667 = vmatmul.mubr.msk.f32.vlgmr.msra.gmra.mrb[60].mxu1 %vm806_vm4, %v6666_v28 }
 0x44d   :  { %5670 = vmatpush3.msk.msra.mxu0 %vm810_vm3, %v6681_v29  ;;  %5671 = vmatprep.mubr.msk.f32.mxu0 %vm5979_vm2, %v5978_v1 }
 0x44e   :  { %5675 = vmatpush3.msk.msra.mxu1 %vm810_vm3, %v6690_v23  ;;  %5676 = vmatprep.mubr.msk.f32.mxu1 %vm5979_vm2, %v5978_v1 }
 0x44f   :  { %5679 = vmatprep.subr.mxu0 %v5978_v1  ;;  %5684 = vmatprep.subr.mxu1 %v5978_v1 }
 0x450   :  { %5672 = vmatmul.mubr.msk.f32.vlgmr.msra.gmra.mrb[62].mxu0 %vm806_vm4, %v6666_v28  ;;  %5677 = vmatmul.mubr.msk.f32.vlgmr.msra.gmra.mrb[62].mxu1 %vm806_vm4, %v6666_v28 }
 0x451   :  { %5680 = vmatpush3.msk.msra.mxu0 %vm810_vm3, %v5952_v32  ;;  %5681 = vmatprep.mubr.msk.f32.mxu0 %vm5979_vm2, %v5978_v1 }
 0x452   :  { %5685 = vmatpush3.msk.msra.mxu1 %vm810_vm3, %v5953_v33  ;;  %5686 = vmatprep.mubr.msk.f32.mxu1 %vm5979_vm2, %v5978_v1 }
 0x453   :  { %5689 = vmatprep.subr.mxu0 %v5978_v1  ;;  %5694 = vmatprep.subr.mxu1 %v5978_v1 }
 0x517   :  { %v3456_v36 = vpop.f32.mrb[56].mxu0  ;;  %v3533_v41 = vpop.f32.mrb[56].mxu1 }
 0x518   :  { %v3460_v45 = vadd.f32 %v3456_v36, %v6309_v34  ;;  %v3537_v0 = vadd.f32 %v3533_v41, %v6312_v35  ;;  %v5643_v47 = vpop.f32.mrb[57].mxu0  ;;  %v5648_v9 = vpop.f32.mrb[57].mxu1 }
 0x51a   :  { %v5212_v49 = vmul.f32 -1.442695, %v3460_v45  ;;  %v5215_v50 = vmul.f32 -1.442695, %v3537_v0 }
 0x51b   :  { %v3610_v55 = vpop.f32.mrb[58].mxu0  ;;  %v3682_v3 = vpop.f32.mrb[58].mxu1 }
 0x51c   :  { %5868 = vpow2.f32 %v5212_v49  ;;  %v5653_v4 = vpop.f32.mrb[59].mxu0  ;;  %v5658_v46 = vpop.f32.mrb[59].mxu1  ;;  %v3686_v56 = vadd.f32 %v3682_v3, %v6334_v53  ;;  %v3614_v37 = vadd.f32 %v3610_v55, %v6332_v52  ;;  %v3694_v49 = vrot.slane %v6618_v63, 4 }
 0x51d   :  { %5870 = vpow2.f32 %v5215_v50 }
 0x51e   :  { %v5220_v16 = vmul.f32 -1.442695, %v3686_v56 }
 0x51f   :  { %v3770_v44 = vpop.f32.mrb[60].mxu0  ;;  %v3850_v54 = vpop.f32.mrb[60].mxu1 }
 0x520   :  { %v3775_v11 = vrot.slane %v3770_v44, 4  ;;  %v3855_v14 = vrot.slane %v3850_v54, 4  ;;  %v5663_v15 = vpop.f32.mrb[61].mxu0  ;;  %v5668_v58 = vpop.f32.mrb[61].mxu1  ;;  %5872 = vpow2.f32 %v5220_v16 }
 0x522   :  { %v3777_v17 = vadd.f32 %v3775_v11, %v6342_v60  ;;  %v3857_v18 = vadd.f32 %v3855_v14, %v6344_v61  ;;  %v4020_v11 = vrot.slane %v6622_v20, 4 }
 0x523   :  { %v3930_v19 = vpop.f32.mrb[62].mxu0  ;;  %v4005_v40 = vpop.f32.mrb[62].mxu1 }
 0x524   :  { %v5223_v57 = vmul.f32 -1.442695, %v3777_v17  ;;  %v5226_v12 = vmul.f32 -1.442695, %v3857_v18  ;;  %v4010_v13 = vrot.slane %v4005_v40, 4  ;;  %v5673_v42 = vpop.f32.mrb[63].mxu0 }
 0x525   :  { %v5678_v6 = vpop.f32.mrb[63].mxu1  ;;  %v3935_v21 = vrot.slane %v3930_v19, 4 }
 0x526   :  { %v5869_v5 = vpop.eup %5868  ;;  %5874 = vpow2.f32 %v5223_v57  ;;  %v4012_v31 = vadd.f32 %v4010_v13, %v6361_v30 }
 0x527   :  { %v5871_v39 = vpop.eup %5870  ;;  %v3464_v24 = vadd.f32 1.0, %v5869_v5  ;;  %5876 = vpow2.f32 %v5226_v12  ;;  %v3937_v32 = vadd.f32 %v3935_v21, %v6359_v27 }
 0x528   :  { %v3541_v10 = vadd.f32 1.0, %v5871_v39  ;;  %5878 = vtanh.f32 %v3614_v37  ;;  %v5231_v25 = vmul.f32 -1.442695, %v4012_v31 }
 0x529   :  { %5880 = vrcp.f32 %v3464_v24 }
 0x52a   :  { %5882 = vrcp.f32 %v3541_v10  ;;  %v5873_v33 = vpop.eup %5872 }
 0x52b   :  { %5884 = vpow2.f32 %v5231_v25  ;;  %v3690_v3 = vadd.f32 1.0, %v5873_v33 }
 0x52c   :  { %5886 = vtanh.f32 %v3937_v32 }
 0x530   :  { %v5875_v36 = vpop.eup %5874 }
 0x531   :  { %v5877_v41 = vpop.eup %5876  ;;  %v3781_v45 = vadd.f32 1.0, %v5875_v36 }
 0x532   :  { %v5879_v0 = vpop.eup %5878  ;;  %v3861_v47 = vadd.f32 1.0, %v5877_v41 }
 0x533   :  { %v5881_v9 = vpop.eup %5880  ;;  %5888 = vrcp.f32 %v3781_v45 }
 0x534   :  { %v5883_v50 = vpop.eup %5882  ;;  %v3697_v55 = vmul.f32 %v5881_v9, %v5879_v0  ;;  %5890 = vrcp.f32 %v3861_v47 }
 0x535   :  { %v3696_v4 = vmul.f32 %v5883_v50, %v3694_v49  ;;  %5892 = vrcp.f32 %v3690_v3  ;;  %v5885_v56 = vpop.eup %5884 }
 0x536   :  { %v5887_v44 = vpop.eup %5886  ;;  %v4016_v58 = vadd.f32 1.0, %v5885_v56 }
 0x537   :  { %v6725_v46 = vadd.f32 %v3697_v55, %v3696_v4 }
 0x539   :  { %5894 = vtanh.f32 %v6725_v46 }
 0x53a   :  { %5896 = vrcp.f32 %v4016_v58 }
 0x53d   :  { %v5889_v54 = vpop.eup %5888 }
 0x53e   :  { %v5891_v14 = vpop.eup %5890  ;;  %v4023_v15 = vmul.f32 %v5889_v54, %v5887_v44 }
 0x53f   :  { %v4022_v63 = vmul.f32 %v5891_v14, %v4020_v11  ;;  %v5893_v17 = vpop.eup %5892 }
 0x541   :  { %v6729_v16 = vadd.f32 %v4023_v15, %v4022_v63 }
 0x543   :  { %v5895_v18 = vpop.eup %5894  ;;  %5898 = vtanh.f32 %v6729_v16 }
 0x544   :  { %v6732_v19 = vmul.f32 %v5895_v18, %v5893_v17  ;;  %v5897_v20 = vpop.eup %5896  ;;  %v4346_v17 = vrot.slane %v6725_v46, 4 }
 0x546   :  { %5682 = vmatmul.mubr.msk.f32.vlgmr.msra.gmra.mrb[64].mxu0 %vm806_vm4, %v6732_v19  ;;  %5687 = vmatmul.mubr.msk.f32.vlgmr.msra.gmra.mrb[64].mxu1 %vm806_vm4, %v6732_v19 }
 0x547   :  { %5690 = vmatpush3.msk.msra.mxu0 %vm810_vm3, %v6633_v51  ;;  %5691 = vmatprep.mubr.msk.f32.mxu0 %vm5979_vm2, %v5978_v1 }
 0x548   :  { %5695 = vmatpush3.msk.msra.mxu1 %vm810_vm3, %v6640_v43  ;;  %5696 = vmatprep.mubr.msk.f32.mxu1 %vm5979_vm2, %v5978_v1 }
 0x549   :  { %5699 = vmatprep.subr.mxu0 %v5978_v1  ;;  %5704 = vmatprep.subr.mxu1 %v5978_v1 }
 0x54a   :  { %5692 = vmatmul.mubr.msk.f32.vlgmr.msra.gmra.mrb[66].mxu0 %vm806_vm4, %v6732_v19  ;;  %5697 = vmatmul.mubr.msk.f32.vlgmr.msra.gmra.mrb[66].mxu1 %vm806_vm4, %v6732_v19 }
 0x54b   :  { %5700 = vmatpush3.msk.msra.mxu0 %vm810_vm3, %v6655_v22  ;;  %5705 = vmatpush3.msk.msra.mxu1 %vm810_vm3, %v6662_v48 }
 0x54c   :  { %5701 = vmatprep.mubr.msk.f32.mxu0 %vm5979_vm2, %v5978_v1  ;;  %5706 = vmatprep.mubr.msk.f32.mxu1 %vm5979_vm2, %v5978_v1 }
 0x54d   :  { %v5899_v51 = vpop.eup %5898  ;;  %5709 = vmatprep.subr.mxu0 %v5978_v1  ;;  %5714 = vmatprep.subr.mxu1 %v5978_v1 }
 0x54e   :  { %v6762_v43 = vmul.f32 %v5899_v51, %v5897_v20 }
 0x550   :  { %v4354_v40 = vrot.slane %v6762_v43, 4 }
 0x552   :  { %5702 = vmatmul.mubr.msk.f32.vlgmr.msra.gmra.mrb[68].mxu0 %vm806_vm4, %v4354_v40  ;;  %5707 = vmatmul.mubr.msk.f32.vlgmr.msra.gmra.mrb[68].mxu1 %vm806_vm4, %v4354_v40 }
 0x553   :  { %5710 = vmatpush3.msk.msra.mxu0 %vm810_vm3, %v6681_v29  ;;  %5711 = vmatprep.mubr.msk.f32.mxu0 %vm5979_vm2, %v5978_v1 }
 0x554   :  { %5715 = vmatpush3.msk.msra.mxu1 %vm810_vm3, %v6690_v23  ;;  %5716 = vmatprep.mubr.msk.f32.mxu1 %vm5979_vm2, %v5978_v1 }
 0x555   :  { %5719 = vmatprep.subr.mxu0 %v5978_v1  ;;  %5724 = vmatprep.subr.mxu1 %v5978_v1 }
 0x556   :  { %5712 = vmatmul.mubr.msk.f32.vlgmr.msra.gmra.mrb[70].mxu0 %vm806_vm4, %v4354_v40  ;;  %5717 = vmatmul.mubr.msk.f32.vlgmr.msra.gmra.mrb[70].mxu1 %vm806_vm4, %v4354_v40 }
 0x557   :  { %5721 = vmatprep.mubr.msk.f32.mxu0 %vm5979_vm2, %v5978_v1  ;;  %5726 = vmatprep.mubr.msk.f32.mxu1 %vm5979_vm2, %v5978_v1 }
 0x619   :  { %v4096_v22 = vpop.f32.mrb[64].mxu0  ;;  %v4176_v48 = vpop.f32.mrb[64].mxu1 }
 0x61a   :  { %v4101_v29 = vrot.slane %v4096_v22, 4  ;;  %v4181_v23 = vrot.slane %v4176_v48, 4  ;;  %v5683_v37 = vpop.f32.mrb[65].mxu0  ;;  %v5688_v57 = vpop.f32.mrb[65].mxu1 }
 0x61c   :  { %v4103_v12 = vadd.f32 %v4101_v29, %v6309_v34  ;;  %v4183_v13 = vadd.f32 %v4181_v23, %v6312_v35  ;;  %v4661_v29 = vrot.slane %v6729_v16, 4 }
 0x61d   :  { %v4256_v42 = vpop.f32.mrb[66].mxu0  ;;  %v4331_v6 = vpop.f32.mrb[66].mxu1 }
 0x61e   :  { %v5234_v5 = vmul.f32 -1.442695, %v4103_v12  ;;  %v5237_v39 = vmul.f32 -1.442695, %v4183_v13  ;;  %v4336_v24 = vrot.slane %v4331_v6, 4  ;;  %v5693_v10 = vpop.f32.mrb[67].mxu0 }
 0x61f   :  { %v5698_v31 = vpop.f32.mrb[67].mxu1  ;;  %v4261_v21 = vrot.slane %v4256_v42, 4 }
 0x620   :  { %5900 = vpow2.f32 %v5234_v5  ;;  %v4338_v1 = vadd.f32 %v4336_v24, %v6334_v53 }
 0x621   :  { %5902 = vpow2.f32 %v5237_v39  ;;  %v4263_v45 = vadd.f32 %v4261_v21, %v6332_v52 }
 0x622   :  { %v5242_v25 = vmul.f32 -1.442695, %v4338_v1 }
 0x624   :  { %5904 = vpow2.f32 %v5242_v25 }
 0x625   :  { %v4423_v32 = vpop.f32.mrb[68].mxu0  ;;  %v4500_v33 = vpop.f32.mrb[68].mxu1 }
 0x626   :  { %v4427_v36 = vadd.f32 %v4423_v32, %v6342_v60  ;;  %v4504_v34 = vadd.f32 %v4500_v33, %v6344_v61  ;;  %v5703_v35 = vpop.f32.mrb[69].mxu0  ;;  %v5708_v41 = vpop.f32.mrb[69].mxu1 }
 0x628   :  { %v5245_v0 = vmul.f32 -1.442695, %v4427_v36  ;;  %v5248_v47 = vmul.f32 -1.442695, %v4504_v34 }
 0x629   :  { %v4577_v9 = vpop.f32.mrb[70].mxu0  ;;  %v4649_v49 = vpop.f32.mrb[70].mxu1 }
 0x62a   :  { %v5901_v50 = vpop.eup %5900  ;;  %5906 = vpow2.f32 %v5245_v0  ;;  %v5713_v53 = vpop.f32.mrb[71].mxu0  ;;  %v4653_v60 = vadd.f32 %v4649_v49, %v6361_v30  ;;  %v4581_v52 = vadd.f32 %v4577_v9, %v6359_v27 }
 0x62b   :  { %v5718_v55 = vpop.f32.mrb[71].mxu1  ;;  %v5903_v3 = vpop.eup %5902  ;;  %v4107_v4 = vadd.f32 1.0, %v5901_v50  ;;  %5908 = vpow2.f32 %v5248_v47 }
 0x62c   :  { %v4187_v56 = vadd.f32 1.0, %v5903_v3  ;;  %5910 = vtanh.f32 %v4263_v45  ;;  %v5253_v61 = vmul.f32 -1.442695, %v4653_v60 }
 0x62d   :  { %5912 = vrcp.f32 %v4107_v4 }
 0x62e   :  { %5914 = vrcp.f32 %v4187_v56  ;;  %v5905_v44 = vpop.eup %5904 }
 0x62f   :  { %5916 = vpow2.f32 %v5253_v61  ;;  %v4342_v51 = vadd.f32 1.0, %v5905_v44 }
 0x630   :  { %5918 = vtanh.f32 %v4581_v52 }
 0x634   :  { %v5907_v54 = vpop.eup %5906 }
 0x635   :  { %v5909_v11 = vpop.eup %5908  ;;  %v4431_v14 = vadd.f32 1.0, %v5907_v54 }
 0x636   :  { %v5911_v15 = vpop.eup %5910  ;;  %v4508_v58 = vadd.f32 1.0, %v5909_v11 }
 0x637   :  { %v5913_v63 = vpop.eup %5912  ;;  %5920 = vrcp.f32 %v4431_v14 }
 0x638   :  { %v5915_v18 = vpop.eup %5914  ;;  %v4349_v20 = vmul.f32 %v5913_v63, %v5911_v15  ;;  %5922 = vrcp.f32 %v4508_v58 }
 0x639   :  { %v4348_v30 = vmul.f32 %v5915_v18, %v4346_v17  ;;  %5924 = vrcp.f32 %v4342_v51  ;;  %v5917_v27 = vpop.eup %5916 }
 0x63a   :  { %v5919_v22 = vpop.eup %5918  ;;  %v4657_v57 = vadd.f32 1.0, %v5917_v27 }
 0x63b   :  { %v4350_v40 = vadd.f32 %v4349_v20, %v4348_v30  ;;  %v5980_v30 = vmov 0  }
 0x63c   :  { %5739 = vset.pattern.permute.xlu1 %v5980_v30  ;;  %5738 = vset.pattern.permute.xlu0 %v5980_v30 }
 0x63d   :  { %5926 = vtanh.f32 %v4350_v40 }
 0x63e   :  { %5928 = vrcp.f32 %v4657_v57 }
 0x641   :  { %v5921_v48 = vpop.eup %5920 }
 0x642   :  { %v5923_v23 = vpop.eup %5922  ;;  %v4664_v37 = vmul.f32 %v5921_v48, %v5919_v22 }
 0x643   :  { %v4663_v12 = vmul.f32 %v5923_v23, %v4661_v29  ;;  %v5925_v46 = vpop.eup %5924 }
 0x645   :  { %v4665_v13 = vadd.f32 %v4664_v37, %v4663_v12 }
 0x647   :  { %v5927_v42 = vpop.eup %5926  ;;  %5930 = vtanh.f32 %v4665_v13 }
 0x648   :  { %v6793_v6 = vmul.f32 %v5927_v42, %v5925_v46  ;;  %v5929_v5 = vpop.eup %5928 }
 0x64a   :  { %v4669_v24 = vrot.slane %v6793_v6, 4  ;;  %v4671_v10 = vrot.slane %v6793_v6, 5  ;;  %v4683_v31 = vrot.slane %v6793_v6, 6 }
 0x64c   :  { %v4679_v25 = vsel %vm4678_vm5, %v4669_v24, %v4671_v10  ;;  %v4685_v32 = vsel %vm4678_vm5, %v4671_v10, %v4683_v31 }
 0x651   :  { %v5931_v39 = vpop.eup %5930 }
 0x652   :  { %v6798_v16 = vmul.f32 %v5931_v39, %v5929_v5 }
 0x654   :  { %v4674_v1 = vrot.slane %v6798_v16, 6  ;;  %v4676_v21 = vrot.slane %v6798_v16, 7 }
 0x656   :  { %v4680_v33 = vsel %vm99_vm0, %v4679_v25, %v4674_v1  ;;  %v4686_v36 = vsel %vm99_vm0, %v4685_v32, %v4676_v21 }
 0x657   :  { %v4682_v34 = vsel %vm4681_vm6, %v4680_v33, %v4676_v21  ;;  %v4687_v35 = vsel %vm4681_vm6, %v4686_v36, %v6798_v16 }
 0x658   :  { %v4708_v41 = vmul.f32 %v4682_v34, %v6552_v8  ;;  %v4709_v45 = vmul.f32 %v4687_v35, %v6666_v28  ;;  %v4696_v0 = vrot.slane %v4682_v34, 4  ;;  %v4700_v47 = vrot.slane %v4687_v35, 4 }
 0x659   :  { %v4688_v9 = vmul.f32 %v4682_v34, %v6406_v59  ;;  %v4689_v49 = vmul.f32 %v4687_v35, %v6798_v16  ;;  %v4720_v14 = vmul.f32 %v4682_v34, %v6732_v19  ;;  %v4721_v15 = vmul.f32 %v4687_v35, %v6500_v2 }
 0x65a   :  { %v4710_v50 = vadd.f32 %v4709_v45, %v4708_v41  ;;  %v4698_v53 = vmul.f32 %v4696_v0, %v6479_v62  ;;  %v4702_v55 = vmul.f32 %v4700_v47, %v6762_v43  ;;  %v4714_v3 = vmul.f32 %v4696_v0, %v6625_v26 }
 0x65b   :  { %v4715_v4 = vmul.f32 %v4700_v47, %v6582_v7  ;;  %v4726_v61 = vmul.f32 %v4696_v0, %v6793_v6  ;;  %v4727_v52 = vmul.f32 %v4700_v47, %v6436_v38  ;;  %v4690_v11 = vadd.f32 %v4689_v49, %v4688_v9 }
 0x65c   :  { %v4711_v56 = vsel %vm4691_vm7, %v4710_v50, 0.0  ;;  %v4703_v60 = vadd.f32 %v4702_v55, %v4698_v53  ;;  %v4722_v18 = vadd.f32 %v4721_v15, %v4720_v14 }
 0x65d   :  { %4712 = vadd.xlane.f32.xlu1 %v4711_v56  ;;  %v4716_v44 = vadd.f32 %v4715_v4, %v4714_v3  ;;  %v4728_v63 = vadd.f32 %v4727_v52, %v4726_v61  ;;  %v4692_v17 = vsel %vm4691_vm7, %v4690_v11, 0.0 }
 0x65e   :  { %v4705_v54 = vsel %vm4704_vm8, %v4703_v60, 0.0  ;;  %v4723_v51 = vsel %vm4691_vm7, %v4722_v18, 0.0 }
 0x65f   :  { %4706 = vadd.xlane.f32.xlu0 %v4705_v54  ;;  %v4717_v58 = vsel %vm4704_vm8, %v4716_v44, 0.0  ;;  %v4729_v20 = vsel %vm4704_vm8, %v4728_v63, 0.0 }
 0x661   :  { %4718 = vadd.xlane.f32.xlu1 %v4717_v58 }
 0x663   :  { %4693 = vadd.xlane.f32.xlu0 %v4692_v17 }
 0x665   :  { %4730 = vadd.xlane.f32.xlu1 %v4729_v20  ;;  %v4863_v20 = vld [vmem:[%s6877_s8] sm:$0x1f] }
 0x666   :  { %5720 = vmatpush3.msk.msra.mxu0 %vm810_vm3, %v4863_v20 }
 0x667   :  { %4724 = vadd.xlane.f32.xlu0 %v4723_v51  ;;  %v4862_v51 = vld [vmem:[%s6876_s7] sm:$0x1f]  ;;  %s5986_s7 = smov [#allocation2]  }
 0x668   :  { %5725 = vmatpush3.msk.msra.mxu1 %vm810_vm3, %v4862_v51  ;;  %s5062_s8 = sshll.u32 %s5986_s7, 4  ;;  %s5063_s8 = int_to_ptr.vmem [resolvable:$true] %s5062_s8 }
 0x669   :  { %s5954_s25 = scalar_lea.vmem %s5063_s8, 64  ;;  %p5959_p1 = scmp.lt.s32.totalorder %s5063_s8, %s5063_s8 }
 0x66a   :  { %p5955_p0 = scmp.ne.s32.totalorder %s5063_s8, %s5954_s25  ;;  %p5960_p2 = scmp.lt.s32.totalorder %s5954_s25, %s5954_s25 }
 0x66c   :  { %p5961_p3 = por %p5960_p2, %p5959_p1 }
 0x66e   :  { %p5962_p4 = pnand %p5961_p3, %p5955_p0 }
 0x6ea   :  { %v4713_v40 = vpop.xlane.xlu1 %4712 }
 0x6ec   :  { %v4707_v27 = vpop.xlane.xlu0 %4706 }
 0x6ed   :  { %v4733_v48 = vrot.slane %v4707_v27, 4 }
 0x6ee   :  { %v4719_v22 = vpop.xlane.xlu1 %4718 }
 0x6ef   :  { %v4738_v37 = vrot.slane %v4719_v22, 4 }
 0x6f0   :  { %v4694_v29 = vpop.xlane.xlu0 %4693 }
 0x6f1   :  { %v4735_v23 = vmax.f32 %v4694_v29, %v4733_v48 }
 0x6f2   :  { %v4731_v12 = vpop.xlane.xlu1 %4730 }
 0x6f3   :  { %v4736_v57 = vmax.f32 %v4735_v23, %v4713_v40  ;;  %v4743_v42 = vrot.slane %v4731_v12, 4 }
 0x6f4   :  { %v4725_v46 = vpop.xlane.xlu0 %4724 }
 0x6f5   :  { %v4740_v13 = vmax.f32 %v4736_v57, %v4738_v37 }
 0x6f7   :  { %v4741_v5 = vmax.f32 %v4740_v13, %v4725_v46 }
 0x6f9   :  { %v4745_v39 = vmax.f32 %v4741_v5, %v4743_v42 }
 0x6fb   :  { %v4746_v24 = vsub.f32 %v4694_v29, %v4745_v39  ;;  %v4750_v10 = vrot.slane %v4745_v39, 4  ;;  %v4755_v1 = vsub.f32 %v4713_v40, %v4745_v39  ;;  %v4761_v35 = vsub.f32 %v4725_v46, %v4745_v39 }
 0x6fd   :  { %v4752_v31 = vsub.f32 %v4707_v27, %v4750_v10  ;;  %v4758_v21 = vsub.f32 %v4719_v22, %v4750_v10  ;;  %v4747_v25 = vmul.f32 1.442695, %v4746_v24  ;;  %v4764_v36 = vsub.f32 %v4731_v12, %v4750_v10 }
 0x6fe   :  { %v4756_v34 = vmul.f32 1.442695, %v4755_v1  ;;  %v4762_v45 = vmul.f32 1.442695, %v4761_v35 }
 0x6ff   :  { %v4753_v32 = vmul.f32 1.442695, %v4752_v31  ;;  %v4759_v33 = vmul.f32 1.442695, %v4758_v21  ;;  %v4765_v41 = vmul.f32 1.442695, %v4764_v36 }
 0x701   :  { %5932 = vpow2.f32 %v4753_v32 }
 0x702   :  { %5934 = vpow2.f32 %v4747_v25 }
 0x703   :  { %5936 = vpow2.f32 %v4759_v33 }
 0x704   :  { %5938 = vpow2.f32 %v4756_v34 }
 0x705   :  { %5940 = vpow2.f32 %v4765_v41 }
 0x706   :  { %5942 = vpow2.f32 %v4762_v45 }
 0x70b   :  { %v5933_v0 = vpop.eup %5932 }
 0x70c   :  { %v5935_v47 = vpop.eup %5934  ;;  %v4768_v9 = vrot.slane %v5933_v0, 4 }
 0x70d   :  { %v5937_v49 = vpop.eup %5936 }
 0x70e   :  { %v4770_v50 = vadd.f32 %v5935_v47, %v4768_v9  ;;  %v5939_v53 = vpop.eup %5938  ;;  %v4773_v3 = vrot.slane %v5937_v49, 4 }
 0x70f   :  { %v5941_v4 = vpop.eup %5940 }
 0x710   :  { %v4771_v55 = vadd.f32 %v5939_v53, %v4770_v50  ;;  %v5943_v60 = vpop.eup %5942  ;;  %v4778_v52 = vrot.slane %v5941_v4, 4 }
 0x712   :  { %v4775_v56 = vadd.f32 %v4773_v3, %v4771_v55 }
 0x714   :  { %v4776_v61 = vadd.f32 %v5943_v60, %v4775_v56 }
 0x716   :  { %v4780_v44 = vadd.f32 %v4778_v52, %v4776_v61 }
 0x718   :  { %5944 = vrcp.f32 %v4780_v44 }
 0x722   :  { %v5945_v54 = vpop.eup %5944 }
 0x723   :  { %v6823_v11 = vmul.f32 %v5945_v54, %v5935_v47  ;;  %v4785_v14 = vrot.slane %v5945_v54, 4  ;;  %v4788_v58 = vmul.f32 %v5945_v54, %v5939_v53  ;;  %v4790_v63 = vmul.f32 %v5945_v54, %v5943_v60 }
 0x725   :  { %4794 = vperm.xlu1 %5739, %v6823_v11   ;;  %v4787_v15 = vmul.f32 %v5933_v0, %v4785_v14  ;;  %v4789_v17 = vmul.f32 %v5937_v49, %v4785_v14  ;;  %v4791_v18 = vmul.f32 %v5941_v4, %v4785_v14 }
 0x727   :  { %4801 = vperm.xlu0 %5738, %v4787_v15   ;;  %v5026_v30 = vrot.slane %v4787_v15, 4  ;;  %v5033_v40 = vrot.slane %v4789_v17, 4  ;;  %v5040_v27 = vrot.slane %v4791_v18, 4 }
 0x729   :  { %4816 = vperm.xlu1 %5739, %v4788_v58  }
 0x72b   :  { %5037 = vrot.lane.b32.xlu0 %v4790_v63, %s5981_s2 }
 0x72d   :  { %4840 = vperm.xlu1 %5739, %v4790_v63  }
 0x731   :  { %4825 = vperm.xlu1 %5739, %v4789_v17  }
 0x735   :  { %4849 = vperm.xlu1 %5739, %v4791_v18  }
 0x739   :  { %5030 = vrot.lane.b32.xlu1 %v4788_v58, %s5982_s18 }
 0x73d   :  { %5027 = vrot.lane.b32.xlu1 %v5026_v30, %s5983_s22 }
 0x741   :  { %5034 = vrot.lane.b32.xlu1 %v5033_v40, %s5984_s23 }
 0x745   :  { %5041 = vrot.lane.b32.xlu1 %v5040_v27, %s5985_s24 }
 0x7a4   :  { %v4795_v22 = vpop.permute.xlu1 %4794 }
 0x7a5   :  { %v4797_v46 = vmul.f32 %v4795_v22, %v6406_v59  ;;  %v4798_v42 = vmul.f32 %v4795_v22, %v6798_v16 }
 0x7a6   :  { %v4802_v48 = vpop.permute.xlu0 %4801 }
 0x7a7   :  { %v4804_v29 = vmul.f32 %v4802_v48, %v6479_v62  ;;  %v4809_v23 = vmul.f32 %v4802_v48, %v6762_v43 }
 0x7a8   :  { %v4817_v37 = vpop.permute.xlu1 %4816 }
 0x7a9   :  { %v4806_v57 = vrot.slane %v4804_v29, 4  ;;  %v4811_v12 = vrot.slane %v4809_v23, 4  ;;  %v4819_v10 = vmul.f32 %v4817_v37, %v6552_v8  ;;  %v4821_v31 = vmul.f32 %v4817_v37, %v6666_v28 }
 0x7aa   :  { %v5038_v49 = vpop.permute.xlu0 %5037 }
 0x7ab   :  { %v4808_v5 = vadd.f32 %v4806_v57, %v4797_v46  ;;  %v4813_v39 = vadd.f32 %v4811_v12, %v4798_v42 }
 0x7ac   :  { %v4841_v13 = vpop.permute.xlu1 %4840 }
 0x7ad   :  { %v4820_v43 = vadd.f32 %v4819_v10, %v4808_v5  ;;  %v4822_v21 = vadd.f32 %v4821_v31, %v4813_v39  ;;  %v4843_v33 = vmul.f32 %v4841_v13, %v6732_v19  ;;  %v4845_v59 = vmul.f32 %v4841_v13, %v6500_v2 }
 0x7b0   :  { %v4826_v24 = vpop.permute.xlu1 %4825 }
 0x7b1   :  { %v4828_v1 = vmul.f32 %v4826_v24, %v6625_v26  ;;  %v4833_v62 = vmul.f32 %v4826_v24, %v6582_v7 }
 0x7b3   :  { %v4830_v25 = vrot.slane %v4828_v1, 4  ;;  %v4835_v32 = vrot.slane %v4833_v62, 4 }
 0x7b4   :  { %v4850_v16 = vpop.permute.xlu1 %4849 }
 0x7b5   :  { %v4832_v36 = vadd.f32 %v4830_v25, %v4820_v43  ;;  %v4837_v34 = vadd.f32 %v4835_v32, %v4822_v21  ;;  %v4852_v35 = vmul.f32 %v4850_v16, %v6793_v6  ;;  %v4857_v8 = vmul.f32 %v4850_v16, %v6436_v38 }
 0x7b7   :  { %v4844_v28 = vadd.f32 %v4843_v33, %v4832_v36  ;;  %v4846_v41 = vadd.f32 %v4845_v59, %v4837_v34  ;;  %v4854_v26 = vrot.slane %v4852_v35, 4  ;;  %v4859_v45 = vrot.slane %v4857_v8, 4 }
 0x7b8   :  { %v5031_v7 = vpop.permute.xlu1 %5030 }
 0x7b9   :  { %v4856_v0 = vadd.f32 %v4854_v26, %v4844_v28  ;;  %v4861_v47 = vadd.f32 %v4859_v45, %v4846_v41 }
 0x7bb   :  { %5722 = vmatmul.mubr.msk.f32.vlgmr.msra.gmra.mrb[72].mxu0 %vm806_vm4, %v4861_v47  ;;  %5727 = vmatmul.mubr.msk.f32.vlgmr.msra.gmra.mrb[72].mxu1 %vm806_vm4, %v4856_v0 }
 0x7bc   :  { %v5028_v2 = vpop.permute.xlu1 %5027 }
 0x7bd   :  { %v5045_v19 = vsel %vm5044_vm9, %v6823_v11, %v5028_v2 }
 0x7be   :  { %v5046_v6 = vsel %vm89_vm1, %v5045_v19, %v5031_v7 }
 0x7c0   :  { %v5035_v9 = vpop.permute.xlu1 %5034 }
 0x7c1   :  { %v5048_v38 = vsel %vm5047_vm10, %v5046_v6, %v5035_v9 }
 0x7c2   :  { %v5050_v50 = vsel %vm5049_vm11, %v5048_v38, %v5038_v49 }
 0x7c4   :  { %v5042_v53 = vpop.permute.xlu1 %5041 }
 0x7c5   :  { %v5051_v55 = vsel %vm806_vm4, %v5050_v50, %v5042_v53 }
 0x7c6   :  { %5053 = vst.msk [vmem:[#allocation2] sm:$0xf] %vm5052_vm12, %v5051_v55 }
 0x7c7   :  { %5965 = shalt.err (!%p5962_p4)
}
 0x7c8   :  { %s5966_s27 = scalar_lea.hbm %s6880_s11, 64 }
 0x7c9   :  { %p5967_p5 = scmp.ne.s32.totalorder %s6880_s11, %s5966_s27  ;;  %p5970_p6 = scmp.lt.u32.totalorder %s5966_s27, %s6880_s11 }
 0x7cb   :  { %p5972_p7 = pnand %p5970_p6, %p5967_p5 }
 0x7cd   :  { %5975 = shalt.err (!%p5972_p7)
}
 0x7ce   :  { %5065 = dma.vmem_to_hbm [thread:$0]  %s5063_s8, 64, %s6880_s11, [#allocation3]   ;;  %v5258_v56 = vld [vmem:[%s6878_s9] ss:$0 sm:$0xff]  ;;  %vm5024_vm13 = vcmask 11264  }
 0x88e   :  { %v4936_v3 = vpop.f32.mrb[72].mxu0  ;;  %v5012_v4 = vpop.f32.mrb[72].mxu1 }
 0x88f   :  { %v5013_v60 = vadd.f32 %v5012_v4, %v4936_v3  ;;  %v5723_v61 = vpop.f32.mrb[73].mxu0  ;;  %v5728_v52 = vpop.f32.mrb[73].mxu1 }
 0x891   :  { %v5023_v44 = vadd.f32 %v5258_v56, %v5013_v60 }
 0x893   :  { %5025 = vst.msk [vmem:[%s6879_s10] sm:$0xf] %vm5024_vm13, %v5023_v44 }
 0x894   :  { %5976 = dma.done.wait [#allocation3], 64  }
 0x895   :  { %5977 = vsyncadd [#allocation3], 4294967232 }
 0x896   :  { %5071 = vsyncpa [#allocation3], 1 }

</bundles_post_ra>
